<compile_context>
chip_gen: v7x
topology: tpu7x:2x2x1
jax: 0.10.0
libtpu: 0.0.40
codegen_flags: <defaults>
</compile_context>

<pallas_src>
import functools

import jax
import jax.numpy as jnp
from jax.experimental import pallas as pl
from jax.experimental.pallas import tpu as pltpu


def _make_kernel(hw: int, thw: int, mask_spatial: bool):
    def kernel(x_ref, w_ref, b_ref, o_ref, acc_ref):
        s = pl.program_id(1)

        @pl.when(s == 0)
        def _init():
            acc_ref[...] = jnp.zeros_like(acc_ref)

        # x tile: [TB, C, THW]; accumulate the spatial sum in f32.
        x = x_ref[...].astype(jnp.float32)
        if mask_spatial:
            # Last spatial tile may run past HW; zero the out-of-bounds columns.
            pos = s * thw + jax.lax.broadcasted_iota(jnp.int32, x.shape, 2)
            x = jnp.where(pos < hw, x, 0.0)
        acc_ref[...] += jnp.sum(x, axis=-1)            # lane-axis reduce -> [TB, C]

        @pl.when(s == pl.num_programs(1) - 1)
        def _finalize():
            # w_ref already carries the 1/HW scale, so acc @ w == mean-pool @ W^T.
            o_ref[...] = (
                jnp.dot(acc_ref[...], w_ref[...], preferred_element_type=jnp.float32)
                + b_ref[...]
            ).astype(o_ref.dtype)

    return kernel


@functools.partial(jax.jit, static_argnames=("block_b", "block_hw"))
def interaction_classifier(features_nchw, weight, bias, *, block_b=None, block_hw=None):
    """features_nchw: [B, C, H, W]; weight: [num_classes, C]; bias: [num_classes]."""
    B, C, H, W = features_nchw.shape
    num_classes = weight.shape[0]
    HW = H * W
    itemsize = jnp.dtype(features_nchw.dtype).itemsize

    # Free, contiguous reshape (no transpose -> no extra full-tensor HBM pass).
    x = features_nchw.reshape(B, C, HW)

    # Fold the 1/HW pooling scale into the (tiny) transposed weight; bias as [1, N].
    w_scaled = weight.T.astype(jnp.float32) * (1.0 / HW)      # [C, num_classes]
    b2 = bias.reshape(1, num_classes).astype(jnp.float32)     # [1, num_classes]

    # ---- tile sizing ----
    if block_b is None:
        block_b = B if B <= 8 else 8                          # sublane-friendly out block
    tb = block_b

    if block_hw is None:
        # Whole spatial extent in one tile when it is cheap; otherwise the largest
        # multiple of 128 lanes keeping the input tile around ~4 MiB (double-buffered
        # by Pallas -> ~8 MiB of VMEM for x, well under the scoped limit on all chips).
        if tb * C * HW * itemsize <= 4 * 1024 * 1024:
            block_hw = HW
        else:
            budget_elems = (4 * 1024 * 1024) // (tb * C * itemsize)
            block_hw = max(128, (budget_elems // 128) * 128)
            block_hw = min(block_hw, HW)
    thw = block_hw
    mask_spatial = (HW % thw) != 0

    cost = pl.CostEstimate(
        flops=B * HW * C + 2 * B * C * num_classes,
        transcendentals=0,
        bytes_accessed=(
            B * C * HW * itemsize
            + C * num_classes * 4
            + num_classes * 4
            + B * num_classes * 4
        ),
    )

    kernel = _make_kernel(HW, thw, mask_spatial)

    return pl.pallas_call(
        kernel,
        out_shape=jax.ShapeDtypeStruct((B, num_classes), jnp.float32),
        grid_spec=pltpu.PrefetchScalarGridSpec(
            num_scalar_prefetch=0,
            grid=(pl.cdiv(B, tb), pl.cdiv(HW, thw)),
            in_specs=[
                pl.BlockSpec((tb, C, thw), lambda b, s: (b, 0, s)),
                # Weight/bias: constant index_map -> fetched once, resident across grid.
                pl.BlockSpec((C, num_classes), lambda b, s: (0, 0)),
                pl.BlockSpec((1, num_classes), lambda b, s: (0, 0)),
            ],
            out_specs=pl.BlockSpec((tb, num_classes), lambda b, s: (b, 0)),
            scratch_shapes=[pltpu.VMEM((tb, C), jnp.float32)],
        ),
        compiler_params=pltpu.CompilerParams(
            dimension_semantics=("parallel", "arbitrary"),
        ),
        cost_estimate=cost,
    )(x, w_scaled, b2)


if __name__ == "__main__":
    # Module defaults: feature_dim=256, num_classes=4; small batch/spatial for the test.
    B, C, H, W = 2, 256, 8, 8
    num_classes = 4

    key = jax.random.PRNGKey(0)
    k_x, k_w, k_b = jax.random.split(key, 3)

    features = jax.random.normal(k_x, (B, C, H, W), dtype=jnp.float32)

    # Deterministic Linear init (PyTorch-style uniform(-1/sqrt(fan_in), 1/sqrt(fan_in)))
    bound = 1.0 / jnp.sqrt(jnp.float32(C))
    weight = jax.random.uniform(k_w, (num_classes, C), jnp.float32, -bound, bound)
    bias = jax.random.uniform(k_b, (num_classes,), jnp.float32, -bound, bound)

    out = interaction_classifier(features, weight, bias)
    out = jax.block_until_ready(out)

    # Pure-JAX reference check of forward semantics
    ref = jnp.mean(features, axis=(2, 3)) @ weight.T + bias
    assert out.shape == (B, num_classes)
    assert jnp.allclose(out, ref, atol=1e-4, rtol=1e-4), "mismatch vs reference"

    print("KERNEL_OK")
</pallas_src>

<mosaic_0001>
module attributes {stable_mosaic.version = 11 : i64} {
  func.func @kernel(%arg0: i32, %arg1: i32, %arg2: memref<2x256x64xf32, #tpu.memory_space<vmem>>, %arg3: memref<256x4xf32, #tpu.memory_space<vmem>>, %arg4: memref<1x4xf32, #tpu.memory_space<vmem>>, %arg5: memref<2x4xf32, #tpu.memory_space<vmem>>, %arg6: memref<2x256xf32, #tpu.memory_space<vmem>>) attributes {dimension_semantics = [#tpu.dimension_semantics<parallel>, #tpu.dimension_semantics<arbitrary>], iteration_bounds = array<i64: 1, 1>, scalar_prefetch = 0 : i64, scratch_operands = 1 : i64, tpu.core_type = #tpu.core_type<tc>, window_params = [{transform_indices = @transform_0, window_bounds = array<i64: 2, 256, 64>}, {pipeline_mode = #tpu.pipeline_mode<synchronous>, transform_indices = @transform_1, window_bounds = array<i64: 256, 4>}, {pipeline_mode = #tpu.pipeline_mode<synchronous>, transform_indices = @transform_2, window_bounds = array<i64: 1, 4>}, {transform_indices = @transform_3, window_bounds = array<i64: 2, 4>}]} {
    %c0_i32 = arith.constant 0 : i32
    %0 = arith.cmpi eq, %arg1, %c0_i32 : i32
    %1 = arith.extui %0 : i1 to i32
    %c0_i32_0 = arith.constant 0 : i32
    %2 = arith.cmpi ne, %1, %c0_i32_0 : i32
    scf.if %2 {
      %cst_9 = arith.constant 0.000000e+00 : f32
      %11 = vector.broadcast %cst_9 : f32 to vector<2x256xf32>
      %c0_10 = arith.constant 0 : index
      %c0_11 = arith.constant 0 : index
      %12 = vector.load %arg6[%c0_10, %c0_11] : memref<2x256xf32, #tpu.memory_space<vmem>>, vector<2x256xf32>
      tpu.vector_store %arg6[%c0_10, %c0_11], %11 {strides = array<i32>} : memref<2x256xf32, #tpu.memory_space<vmem>>, vector<2x256xf32>,
    } else {
    }
    %c0 = arith.constant 0 : index
    %c0_1 = arith.constant 0 : index
    %c0_2 = arith.constant 0 : index
    %3 = vector.load %arg2[%c0, %c0_1, %c0_2] : memref<2x256x64xf32, #tpu.memory_space<vmem>>, vector<2x256x64xf32>
    %c0_3 = arith.constant 0 : index
    %c0_4 = arith.constant 0 : index
    %4 = vector.load %arg6[%c0_3, %c0_4] : memref<2x256xf32, #tpu.memory_space<vmem>>, vector<2x256xf32>
    %cst = arith.constant dense<0.000000e+00> : vector<2x256xf32>
    %5 = vector.multi_reduction <add>, %3, %cst [2] : vector<2x256x64xf32> to vector<2x256xf32>
    %6 = arith.addf %4, %5 : vector<2x256xf32>
    %c0_5 = arith.constant 0 : index
    %c0_6 = arith.constant 0 : index
    %7 = vector.load %arg6[%c0_5, %c0_6] : memref<2x256xf32, #tpu.memory_space<vmem>>, vector<2x256xf32>
    tpu.vector_store %arg6[%c0_5, %c0_6], %6 {strides = array<i32>} : memref<2x256xf32, #tpu.memory_space<vmem>>, vector<2x256xf32>,
    %c0_i32_7 = arith.constant 0 : i32
    %8 = arith.cmpi eq, %arg1, %c0_i32_7 : i32
    %9 = arith.extui %8 : i1 to i32
    %c0_i32_8 = arith.constant 0 : i32
    %10 = arith.cmpi ne, %9, %c0_i32_8 : i32
    scf.if %10 {
      %c0_9 = arith.constant 0 : index
      %c0_10 = arith.constant 0 : index
      %11 = vector.load %arg6[%c0_9, %c0_10] : memref<2x256xf32, #tpu.memory_space<vmem>>, vector<2x256xf32>
      %c0_11 = arith.constant 0 : index
      %c0_12 = arith.constant 0 : index
      %12 = vector.load %arg3[%c0_11, %c0_12] : memref<256x4xf32, #tpu.memory_space<vmem>>, vector<256x4xf32>
      %cst_13 = arith.constant dense<0.000000e+00> : vector<2x4xf32>
      %13 = tpu.matmul %11, %12, %cst_13 {dimension_numbers = #tpu.dot_dimension_numbers<[1], [0], [0], [1], [0, 0, 1, 1], [], []>} : vector<2x256xf32>, vector<256x4xf32>, vector<2x4xf32> -> vector<2x4xf32>
      %c0_14 = arith.constant 0 : index
      %c0_15 = arith.constant 0 : index
      %14 = vector.load %arg4[%c0_14, %c0_15] : memref<1x4xf32, #tpu.memory_space<vmem>>, vector<1x4xf32>
      %15 = vector.broadcast %14 : vector<1x4xf32> to vector<2x4xf32>
      %16 = arith.addf %13, %15 : vector<2x4xf32>
      %c0_16 = arith.constant 0 : index
      %c0_17 = arith.constant 0 : index
      %17 = vector.load %arg5[%c0_16, %c0_17] : memref<2x4xf32, #tpu.memory_space<vmem>>, vector<2x4xf32>
      tpu.vector_store %arg5[%c0_16, %c0_17], %16 {strides = array<i32>} : memref<2x4xf32, #tpu.memory_space<vmem>>, vector<2x4xf32>,
    } else {
    }
    return
  }
  func.func @transform_0(%arg0: i32, %arg1: i32) -> (i32, i32, i32) {
    %c0_i32 = arith.constant 0 : i32
    %c0_i32_0 = arith.constant 0 : i32
    return %arg0, %c0_i32, %arg1 : i32, i32, i32
  }
  func.func @transform_1(%arg0: i32, %arg1: i32) -> (i32, i32) {
    %c0_i32 = arith.constant 0 : i32
    %c0_i32_0 = arith.constant 0 : i32
    %c0_i32_1 = arith.constant 0 : i32
    return %c0_i32, %c0_i32_0 : i32, i32
  }
  func.func @transform_2(%arg0: i32, %arg1: i32) -> (i32, i32) {
    %c0_i32 = arith.constant 0 : i32
    %c0_i32_0 = arith.constant 0 : i32
    %c0_i32_1 = arith.constant 0 : i32
    return %c0_i32, %c0_i32_0 : i32, i32
  }
  func.func @transform_3(%arg0: i32, %arg1: i32) -> (i32, i32) {
    %c0_i32 = arith.constant 0 : i32
    %c0_i32_0 = arith.constant 0 : i32
    return %arg0, %c0_i32 : i32, i32
  }
}

</mosaic_0001>

<bundles_post_ra>
// kernel: interaction_classifier.1
= control target key start
LH: loop header
LB: loop body
LE: loop exit
PB: predicated region body
PF: predicated region fallthrough
CT: control target
= control target key end

     0   :  { %vm85_vm0 = vcmask 523264   ;;  %v4019_v28 = vmov 0   ;;  %s5427_s0 = inlined_call_operand.vmem [shape: f32[2,256,64], index: 0, kind: input, shape index: {}]   ;;  %s5428_s1 = inlined_call_operand.vmem [shape: f32[256,4], index: 1, kind: input, shape index: {}]   ;;  %s5429_s2 = inlined_call_operand.vmem [shape: f32[1,4], index: 2, kind: input, shape index: {}]   ;;  %s5430_s3 = inlined_call_operand.hbm [shape: f32[2,4], index: 3, kind: output, shape index: {}]  }
   0x1   :  { %v36_v0 = vld [vmem:[%s5427_s0 + $0x80] sm:$0xff]  ;;  %v37_v2 = vld [vmem:[%s5427_s0 + $0x88] sm:$0xff]  ;;  %v38_v16 = vld [vmem:[%s5427_s0 + $0x90] sm:$0xff]  ;;  %3993 = vset.pattern.permute.xlu0 %v4019_v28  ;;  %3994 = vset.pattern.permute.xlu1 %v4019_v28 }
   0x2   :  { %v20_v1 = vld [vmem:[%s5427_s0] sm:$0xff]  ;;  %v134_v3 = vsel %vm85_vm0, %v36_v0, 0.0  ;;  %v21_v5 = vld [vmem:[%s5427_s0 + $0x8] sm:$0xff]  ;;  %v137_v6 = vsel %vm85_vm0, %v37_v2, 0.0  ;;  %v22_v17 = vld [vmem:[%s5427_s0 + $0x10] sm:$0xff]  ;;  %v140_v18 = vsel %vm85_vm0, %v38_v16, 0.0 }
   0x3   :  { %v86_v4 = vsel %vm85_vm0, %v20_v1, 0.0  ;;  %135 = vadd.xlane.f32.xlu1 %v134_v3  ;;  %v89_v7 = vsel %vm85_vm0, %v21_v5, 0.0  ;;  %v53_v8 = vld [vmem:[%s5427_s0 + $0x108] sm:$0xff]  ;;  %v52_v9 = vld [vmem:[%s5427_s0 + $0x100] sm:$0xff]  ;;  %v92_v19 = vsel %vm85_vm0, %v22_v17, 0.0  ;;  %v70_v20 = vld [vmem:[%s5427_s0 + $0x190] sm:$0xff] }
   0x4   :  { %87 = vadd.xlane.f32.xlu0 %v86_v4  ;;  %v185_v10 = vsel %vm85_vm0, %v53_v8, 0.0  ;;  %v182_v11 = vsel %vm85_vm0, %v52_v9, 0.0  ;;  %v69_v12 = vld [vmem:[%s5427_s0 + $0x188] sm:$0xff]  ;;  %v68_v13 = vld [vmem:[%s5427_s0 + $0x180] sm:$0xff]  ;;  %v54_v21 = vld [vmem:[%s5427_s0 + $0x110] sm:$0xff]  ;;  %v236_v22 = vsel %vm85_vm0, %v70_v20, 0.0 }
   0x5   :  { %v233_v14 = vsel %vm85_vm0, %v69_v12, 0.0  ;;  %v230_v15 = vsel %vm85_vm0, %v68_v13, 0.0  ;;  %v188_v23 = vsel %vm85_vm0, %v54_v21, 0.0  ;;  %v39_v24 = vld [vmem:[%s5427_s0 + $0x98] sm:$0xff] }
   0x6   :  { %v23_v25 = vld [vmem:[%s5427_s0 + $0x18] sm:$0xff]  ;;  %v143_v26 = vsel %vm85_vm0, %v39_v24, 0.0 }
   0x7   :  { %138 = vadd.xlane.f32.xlu1 %v137_v6  ;;  %v95_v27 = vsel %vm85_vm0, %v23_v25, 0.0 }
   0x8   :  { %90 = vadd.xlane.f32.xlu0 %v89_v7 }
   0xb   :  { %186 = vadd.xlane.f32.xlu1 %v185_v10 }
   0xc   :  { %183 = vadd.xlane.f32.xlu0 %v182_v11 }
   0xf   :  { %234 = vadd.xlane.f32.xlu1 %v233_v14 }
  0x10   :  { %231 = vadd.xlane.f32.xlu0 %v230_v15 }
  0x13   :  { %141 = vadd.xlane.f32.xlu1 %v140_v18 }
  0x14   :  { %93 = vadd.xlane.f32.xlu0 %v92_v19 }
  0x17   :  { %237 = vadd.xlane.f32.xlu1 %v236_v22 }
  0x18   :  { %189 = vadd.xlane.f32.xlu0 %v188_v23 }
  0x19   :  { %8 = vsyncpa [#allocation4], 0  ;;  %v71_v29 = vld [vmem:[%s5427_s0 + $0x198] sm:$0xff]  ;;  %v40_v33 = vld [vmem:[%s5427_s0 + $0xa0] sm:$0xff]  ;;  %vm3425_vm1 = vcmask 130112   ;;  %vm3432_vm2 = vcmask 195712  }
  0x1a   :  { %v55_v30 = vld [vmem:[%s5427_s0 + $0x118] sm:$0xff]  ;;  %v239_v31 = vsel %vm85_vm0, %v71_v29, 0.0  ;;  %v24_v34 = vld [vmem:[%s5427_s0 + $0x20] sm:$0xff]  ;;  %v146_v35 = vsel %vm85_vm0, %v40_v33, 0.0  ;;  %v41_v41 = vld [vmem:[%s5427_s0 + $0xa8] sm:$0xff]  ;;  %vm3439_vm3 = vcmask 261312  }
  0x1b   :  { %144 = vadd.xlane.f32.xlu1 %v143_v26  ;;  %v191_v32 = vsel %vm85_vm0, %v55_v30, 0.0  ;;  %v98_v36 = vsel %vm85_vm0, %v24_v34, 0.0  ;;  %v72_v37 = vld [vmem:[%s5427_s0 + $0x1a0] sm:$0xff]  ;;  %v25_v42 = vld [vmem:[%s5427_s0 + $0x28] sm:$0xff]  ;;  %v149_v43 = vsel %vm85_vm0, %v41_v41, 0.0  ;;  %v42_v49 = vld [vmem:[%s5427_s0 + $0xb0] sm:$0xff] }
  0x1c   :  { %96 = vadd.xlane.f32.xlu0 %v95_v27  ;;  %v56_v38 = vld [vmem:[%s5427_s0 + $0x120] sm:$0xff]  ;;  %v242_v39 = vsel %vm85_vm0, %v72_v37, 0.0  ;;  %v101_v44 = vsel %vm85_vm0, %v25_v42, 0.0  ;;  %v73_v45 = vld [vmem:[%s5427_s0 + $0x1a8] sm:$0xff]  ;;  %v26_v50 = vld [vmem:[%s5427_s0 + $0x30] sm:$0xff]  ;;  %v152_v51 = vsel %vm85_vm0, %v42_v49, 0.0 }
  0x1d   :  { %v194_v40 = vsel %vm85_vm0, %v56_v38, 0.0  ;;  %v57_v46 = vld [vmem:[%s5427_s0 + $0x128] sm:$0xff]  ;;  %v245_v47 = vsel %vm85_vm0, %v73_v45, 0.0  ;;  %v104_v52 = vsel %vm85_vm0, %v26_v50, 0.0  ;;  %v74_v53 = vld [vmem:[%s5427_s0 + $0x1b0] sm:$0xff]  ;;  %v43_v57 = vld [vmem:[%s5427_s0 + $0xb8] sm:$0xff] }
  0x1e   :  { %v197_v48 = vsel %vm85_vm0, %v57_v46, 0.0  ;;  %v58_v54 = vld [vmem:[%s5427_s0 + $0x130] sm:$0xff]  ;;  %v248_v55 = vsel %vm85_vm0, %v74_v53, 0.0  ;;  %v27_v58 = vld [vmem:[%s5427_s0 + $0x38] sm:$0xff]  ;;  %v155_v59 = vsel %vm85_vm0, %v43_v57, 0.0  ;;  %v44_v1 = vld [vmem:[%s5427_s0 + $0xc0] sm:$0xff] }
  0x1f   :  { %240 = vadd.xlane.f32.xlu1 %v239_v31  ;;  %v200_v56 = vsel %vm85_vm0, %v58_v54, 0.0  ;;  %v107_v60 = vsel %vm85_vm0, %v27_v58, 0.0  ;;  %v75_v61 = vld [vmem:[%s5427_s0 + $0x1b8] sm:$0xff]  ;;  %v28_v2 = vld [vmem:[%s5427_s0 + $0x40] sm:$0xff]  ;;  %v158_v3 = vsel %vm85_vm0, %v44_v1, 0.0  ;;  %v45_v9 = vld [vmem:[%s5427_s0 + $0xc8] sm:$0xff] }
  0x20   :  { %192 = vadd.xlane.f32.xlu0 %v191_v32  ;;  %v59_v62 = vld [vmem:[%s5427_s0 + $0x138] sm:$0xff]  ;;  %v251_v63 = vsel %vm85_vm0, %v75_v61, 0.0  ;;  %v110_v4 = vsel %vm85_vm0, %v28_v2, 0.0  ;;  %v76_v5 = vld [vmem:[%s5427_s0 + $0x1c0] sm:$0xff]  ;;  %v29_v10 = vld [vmem:[%s5427_s0 + $0x48] sm:$0xff]  ;;  %v161_v11 = vsel %vm85_vm0, %v45_v9, 0.0 }
  0x21   :  { %v203_v0 = vsel %vm85_vm0, %v59_v62, 0.0  ;;  %v60_v6 = vld [vmem:[%s5427_s0 + $0x140] sm:$0xff]  ;;  %v254_v7 = vsel %vm85_vm0, %v76_v5, 0.0  ;;  %v113_v12 = vsel %vm85_vm0, %v29_v10, 0.0  ;;  %v77_v13 = vld [vmem:[%s5427_s0 + $0x1c8] sm:$0xff]  ;;  %v46_v17 = vld [vmem:[%s5427_s0 + $0xd0] sm:$0xff] }
  0x22   :  { %v206_v8 = vsel %vm85_vm0, %v60_v6, 0.0  ;;  %v61_v14 = vld [vmem:[%s5427_s0 + $0x148] sm:$0xff]  ;;  %v257_v15 = vsel %vm85_vm0, %v77_v13, 0.0  ;;  %v30_v18 = vld [vmem:[%s5427_s0 + $0x50] sm:$0xff]  ;;  %v164_v19 = vsel %vm85_vm0, %v46_v17, 0.0  ;;  %v47_v25 = vld [vmem:[%s5427_s0 + $0xd8] sm:$0xff] }
  0x23   :  { %147 = vadd.xlane.f32.xlu1 %v146_v35  ;;  %v209_v16 = vsel %vm85_vm0, %v61_v14, 0.0  ;;  %v116_v20 = vsel %vm85_vm0, %v30_v18, 0.0  ;;  %v78_v21 = vld [vmem:[%s5427_s0 + $0x1d0] sm:$0xff]  ;;  %v31_v26 = vld [vmem:[%s5427_s0 + $0x58] sm:$0xff]  ;;  %v167_v27 = vsel %vm85_vm0, %v47_v25, 0.0  ;;  %v48_v33 = vld [vmem:[%s5427_s0 + $0xe0] sm:$0xff] }
  0x24   :  { %99 = vadd.xlane.f32.xlu0 %v98_v36  ;;  %v62_v22 = vld [vmem:[%s5427_s0 + $0x150] sm:$0xff]  ;;  %v260_v23 = vsel %vm85_vm0, %v78_v21, 0.0  ;;  %v119_v28 = vsel %vm85_vm0, %v31_v26, 0.0  ;;  %v79_v29 = vld [vmem:[%s5427_s0 + $0x1d8] sm:$0xff]  ;;  %v32_v34 = vld [vmem:[%s5427_s0 + $0x60] sm:$0xff]  ;;  %v170_v35 = vsel %vm85_vm0, %v48_v33, 0.0 }
  0x25   :  { %v212_v24 = vsel %vm85_vm0, %v62_v22, 0.0  ;;  %v63_v30 = vld [vmem:[%s5427_s0 + $0x158] sm:$0xff]  ;;  %v263_v31 = vsel %vm85_vm0, %v79_v29, 0.0  ;;  %v122_v36 = vsel %vm85_vm0, %v32_v34, 0.0  ;;  %v80_v37 = vld [vmem:[%s5427_s0 + $0x1e0] sm:$0xff]  ;;  %v49_v41 = vld [vmem:[%s5427_s0 + $0xe8] sm:$0xff] }
  0x26   :  { %v215_v32 = vsel %vm85_vm0, %v63_v30, 0.0  ;;  %v64_v38 = vld [vmem:[%s5427_s0 + $0x160] sm:$0xff]  ;;  %v33_v42 = vld [vmem:[%s5427_s0 + $0x68] sm:$0xff]  ;;  %v50_v49 = vld [vmem:[%s5427_s0 + $0xf0] sm:$0xff]  ;;  %v4020_v1 = vmov 269488144  }
  0x27   :  { %243 = vadd.xlane.f32.xlu1 %v242_v39  ;;  %v266_v39 = vsel %vm85_vm0, %v80_v37, 0.0  ;;  %v81_v45 = vld [vmem:[%s5427_s0 + $0x1e8] sm:$0xff]  ;;  %v34_v50 = vld [vmem:[%s5427_s0 + $0x70] sm:$0xff]  ;;  %v51_v57 = vld [vmem:[%s5427_s0 + $0xf8] sm:$0xff]  ;;  %v343_v2 = vunpack.c.l.s4 %v4020_v1  ;;  %v4022_v6 = vmov 1414812756  }
  0x28   :  { %195 = vadd.xlane.f32.xlu0 %v194_v40  ;;  %v218_v40 = vsel %vm85_vm0, %v64_v38, 0.0  ;;  %v65_v46 = vld [vmem:[%s5427_s0 + $0x168] sm:$0xff]  ;;  %v82_v53 = vld [vmem:[%s5427_s0 + $0x1f0] sm:$0xff]  ;;  %v35_v58 = vld [vmem:[%s5427_s0 + $0x78] sm:$0xff]  ;;  %vm3446_vm4 = vcmask 326912   ;;  %vm3453_vm5 = vcmask 392512  }
  0x29   :  { %v66_v54 = vld [vmem:[%s5427_s0 + $0x170] sm:$0xff]  ;;  %v83_v61 = vld [vmem:[%s5427_s0 + $0x1f8] sm:$0xff]  ;;  %v344_v10 = vunpack.c.0.s8 %v343_v2  ;;  %vm3460_vm6 = vcmask 458112   ;;  %vm3467_vm7 = vcmask 523712   ;;  %vm3474_vm8 = vcmask 589312   ;;  %s4026_s13 = smov [#allocation3]  }
  0x2a   :  { %v67_v62 = vld [vmem:[%s5427_s0 + $0x178] sm:$0xff]  ;;  %vm3481_vm9 = vcmask 654912   ;;  %vm3488_vm10 = vcmask 720512   ;;  %vm3495_vm11 = vcmask 786112   ;;  %vm3502_vm12 = vcmask 851712   ;;  %s3908_s14 = sshll.u32 %s4026_s13, 4  ;;  %s3909_s14 = int_to_ptr.vmem [resolvable:$true] %s3908_s14 }
  0x2b   :  { %150 = vadd.xlane.f32.xlu1 %v149_v43  ;;  %v173_v43 = vsel %vm85_vm0, %v49_v41, 0.0  ;;  %vm3509_vm13 = vcmask 917312   ;;  %vm3516_vm14 = vcmask 982912   ;;  %vm3523_vm15 = vcmask 1048512   ;;  %s3995_s15 = scalar_lea.vmem %s3909_s14, 32  ;;  %p4000_p1 = scmp.lt.s32.totalorder %s3909_s14, %s3909_s14 }
  0x2c   :  { %102 = vadd.xlane.f32.xlu0 %v101_v44  ;;  %v125_v44 = vsel %vm85_vm0, %v33_v42, 0.0  ;;  %p3996_p0 = scmp.ne.s32.totalorder %s3909_s14, %s3995_s15  ;;  %p4001_p2 = scmp.lt.s32.totalorder %s3995_s15, %s3995_s15 }
  0x2e   :  { %p4002_p3 = por %p4001_p2, %p4000_p1 }
  0x2f   :  { %246 = vadd.xlane.f32.xlu1 %v245_v47  ;;  %v269_v47 = vsel %vm85_vm0, %v81_v45, 0.0 }
  0x30   :  { %198 = vadd.xlane.f32.xlu0 %v197_v48  ;;  %v221_v48 = vsel %vm85_vm0, %v65_v46, 0.0  ;;  %p4003_p4 = pnand %p4002_p3, %p3996_p0 }
  0x33   :  { %153 = vadd.xlane.f32.xlu1 %v152_v51  ;;  %v176_v51 = vsel %vm85_vm0, %v50_v49, 0.0 }
  0x34   :  { %105 = vadd.xlane.f32.xlu0 %v104_v52  ;;  %v128_v52 = vsel %vm85_vm0, %v34_v50, 0.0 }
  0x37   :  { %249 = vadd.xlane.f32.xlu1 %v248_v55  ;;  %v272_v55 = vsel %vm85_vm0, %v82_v53, 0.0 }
  0x38   :  { %201 = vadd.xlane.f32.xlu0 %v200_v56  ;;  %v224_v56 = vsel %vm85_vm0, %v66_v54, 0.0 }
  0x3b   :  { %156 = vadd.xlane.f32.xlu1 %v155_v59  ;;  %v179_v59 = vsel %vm85_vm0, %v51_v57, 0.0 }
  0x3c   :  { %108 = vadd.xlane.f32.xlu0 %v107_v60  ;;  %v131_v60 = vsel %vm85_vm0, %v35_v58, 0.0 }
  0x3f   :  { %252 = vadd.xlane.f32.xlu1 %v251_v63  ;;  %v275_v63 = vsel %vm85_vm0, %v83_v61, 0.0 }
  0x40   :  { %204 = vadd.xlane.f32.xlu0 %v203_v0  ;;  %v227_v0 = vsel %vm85_vm0, %v67_v62, 0.0  ;;  %vm3762_vm0 = vcmask 1041409  }
  0x43   :  { %159 = vadd.xlane.f32.xlu1 %v158_v3  ;;  %v345_v3 = vlaneseq }
  0x44   :  { %111 = vadd.xlane.f32.xlu0 %v110_v4  ;;  %v4021_v4 = vmov 842150450  }
  0x45   :  { %v350_v5 = vunpack.c.l.s4 %v4021_v4 }
  0x47   :  { %255 = vadd.xlane.f32.xlu1 %v254_v7  ;;  %v357_v7 = vunpack.c.l.s4 %v4022_v6 }
  0x48   :  { %207 = vadd.xlane.f32.xlu0 %v206_v8  ;;  %v4023_v8 = vmov 1987475062  }
  0x49   :  { %v364_v9 = vunpack.c.l.s4 %v4023_v8  ;;  %v358_v13 = vunpack.c.0.s8 %v357_v7 }
  0x4b   :  { %162 = vadd.xlane.f32.xlu1 %v161_v11  ;;  %v4304_v11 = vshrl.u32 %v345_v3, 7  ;;  %v365_v14 = vunpack.c.0.s8 %v364_v9 }
  0x4c   :  { %114 = vadd.xlane.f32.xlu0 %v113_v12  ;;  %v351_v12 = vunpack.c.0.s8 %v350_v5 }
  0x4d   :  { %v4307_v17 = vsub.s32 %v344_v10, %v4304_v11 }
  0x4e   :  { %v4310_v18 = vsub.s32 %v351_v12, %v4304_v11 }
  0x4f   :  { %258 = vadd.xlane.f32.xlu1 %v257_v15  ;;  %v4024_v15 = vmov 1983009808  }
  0x50   :  { %210 = vadd.xlane.f32.xlu0 %v209_v16  ;;  %v2137_v16 = vunpack.c.l.s4 %v4024_v15 }
  0x52   :  { %v2138_v21 = vunpack.c.0.s8 %v2137_v16 }
  0x53   :  { %165 = vadd.xlane.f32.xlu1 %v164_v19  ;;  %v4313_v19 = vsub.s32 %v358_v13, %v4304_v11 }
  0x54   :  { %117 = vadd.xlane.f32.xlu0 %v116_v20  ;;  %v4316_v20 = vsub.s32 %v365_v14, %v4304_v11 }
  0x57   :  { %261 = vadd.xlane.f32.xlu1 %v260_v23 }
  0x58   :  { %213 = vadd.xlane.f32.xlu0 %v212_v24 }
  0x5b   :  { %168 = vadd.xlane.f32.xlu1 %v167_v27 }
  0x5c   :  { %120 = vadd.xlane.f32.xlu0 %v119_v28 }
  0x5f   :  { %264 = vadd.xlane.f32.xlu1 %v263_v31 }
  0x60   :  { %216 = vadd.xlane.f32.xlu0 %v215_v32  ;;  %v4327_v32 = vsub.s32 %v2138_v21, %v4304_v11 }
  0x63   :  { %171 = vadd.xlane.f32.xlu1 %v170_v35 }
  0x64   :  { %123 = vadd.xlane.f32.xlu0 %v122_v36 }
  0x67   :  { %267 = vadd.xlane.f32.xlu1 %v266_v39 }
  0x68   :  { %219 = vadd.xlane.f32.xlu0 %v218_v40 }
  0x6b   :  { %174 = vadd.xlane.f32.xlu1 %v173_v43 }
  0x6c   :  { %126 = vadd.xlane.f32.xlu0 %v125_v44 }
  0x6f   :  { %270 = vadd.xlane.f32.xlu1 %v269_v47 }
  0x70   :  { %222 = vadd.xlane.f32.xlu0 %v221_v48 }
  0x73   :  { %177 = vadd.xlane.f32.xlu1 %v176_v51 }
  0x74   :  { %129 = vadd.xlane.f32.xlu0 %v128_v52 }
  0x77   :  { %273 = vadd.xlane.f32.xlu1 %v272_v55 }
  0x78   :  { %225 = vadd.xlane.f32.xlu0 %v224_v56 }
  0x7b   :  { %180 = vadd.xlane.f32.xlu1 %v179_v59 }
  0x7c   :  { %132 = vadd.xlane.f32.xlu0 %v131_v60 }
  0x7f   :  { %276 = vadd.xlane.f32.xlu1 %v275_v63 }
  0x80   :  { %228 = vadd.xlane.f32.xlu0 %v227_v0 }
  0x90   :  { %v136_v22 = vpop.xlane.xlu1 %135 }
  0x91   :  { %v88_v23 = vpop.xlane.xlu0 %87  ;;  %v796_v24 = vrot.slane %v136_v22, %v4307_v17  ;;  %v803_v25 = vrot.slane %v136_v22, %v4310_v18  ;;  %v810_v26 = vrot.slane %v136_v22, %v4313_v19  ;;  %v817_v27 = vrot.slane %v136_v22, %v4316_v20 }
  0x92   :  { %v348_v28 = vrot.slane %v88_v23, %v4307_v17  ;;  %v355_v29 = vrot.slane %v88_v23, %v4310_v18  ;;  %v362_v30 = vrot.slane %v88_v23, %v4313_v19  ;;  %v369_v31 = vrot.slane %v88_v23, %v4316_v20 }
  0x93   :  { %v2406_v37 = vcombine.low %v796_v24, %v803_v25  ;;  %v2407_v38 = vcombine.low %v810_v26, %v817_v27 }
  0x94   :  { %v139_v33 = vpop.xlane.xlu1 %138  ;;  %v2134_v35 = vcombine.low %v348_v28, %v355_v29  ;;  %v2135_v36 = vcombine.low %v362_v30, %v369_v31 }
  0x95   :  { %v91_v34 = vpop.xlane.xlu0 %90  ;;  %v824_v39 = vrot.slane %v139_v33, %v4307_v17  ;;  %v831_v40 = vrot.slane %v139_v33, %v4310_v18  ;;  %v838_v41 = vrot.slane %v139_v33, %v4313_v19  ;;  %v845_v42 = vrot.slane %v139_v33, %v4316_v20 }
  0x96   :  { %v376_v43 = vrot.slane %v91_v34, %v4307_v17  ;;  %v383_v44 = vrot.slane %v91_v34, %v4310_v18  ;;  %v390_v45 = vrot.slane %v91_v34, %v4313_v19  ;;  %v397_v46 = vrot.slane %v91_v34, %v4316_v20 }
  0x97   :  { %v2142_v47 = vrot.slane %v2134_v35, %v4327_v32  ;;  %v2149_v48 = vrot.slane %v2135_v36, %v4327_v32  ;;  %v2414_v53 = vrot.slane %v2406_v37, %v4327_v32  ;;  %v2421_v55 = vrot.slane %v2407_v38, %v4327_v32 }
  0x98   :  { %v187_v49 = vpop.xlane.xlu1 %186  ;;  %v2151_v50 = vcombine.low %v376_v43, %v383_v44  ;;  %v2152_v51 = vcombine.low %v390_v45, %v397_v46  ;;  %v2423_v56 = vcombine.low %v824_v39, %v831_v40  ;;  %v2424_v57 = vcombine.low %v838_v41, %v845_v42 }
  0x99   :  { %v184_v52 = vpop.xlane.xlu0 %183  ;;  %v1272_v54 = vrot.slane %v187_v49, %v4307_v17  ;;  %v1279_v58 = vrot.slane %v187_v49, %v4310_v18  ;;  %v2150_v59 = vcombine.low %v2142_v47, %v2149_v48  ;;  %v1286_v6 = vrot.slane %v187_v49, %v4313_v19 }
  0x9a   :  { %v2159_v60 = vrot.slane %v2151_v50, %v4327_v32  ;;  %v2166_v61 = vrot.slane %v2152_v51, %v4327_v32  ;;  %v1244_v62 = vrot.slane %v184_v52, %v4307_v17  ;;  %v1251_v63 = vrot.slane %v184_v52, %v4310_v18 }
  0x9b   :  { %v1258_v0 = vrot.slane %v184_v52, %v4313_v19  ;;  %v1265_v1 = vrot.slane %v184_v52, %v4316_v20  ;;  %3223 = vperm.xlu0 %3993, %v2150_v59   ;;  %v1293_v7 = vrot.slane %v187_v49, %v4316_v20  ;;  %v2422_v8 = vcombine.low %v2414_v53, %v2421_v55 }
  0x9c   :  { %v4349_v2 = vpop.xlane.xlu1 %234  ;;  %v2167_v4 = vcombine.low %v2159_v60, %v2166_v61  ;;  %v2431_v9 = vrot.slane %v2423_v56, %v4327_v32  ;;  %v2438_v10 = vrot.slane %v2424_v57, %v4327_v32  ;;  %v2678_v12 = vcombine.low %v1244_v62, %v1251_v63 }
  0x9d   :  { %v232_v5 = vpop.xlane.xlu0 %231  ;;  %v2679_v13 = vcombine.low %v1258_v0, %v1265_v1  ;;  %v2695_v14 = vcombine.low %v1272_v54, %v1279_v58  ;;  %v1720_v29 = vrot.slane %v4349_v2, %v4307_v17  ;;  %v1727_v30 = vrot.slane %v4349_v2, %v4310_v18 }
  0x9e   :  { %3226 = vperm.xlu1 %3994, %v2167_v4   ;;  %v1692_v16 = vrot.slane %v232_v5, %v4307_v17  ;;  %v1699_v21 = vrot.slane %v232_v5, %v4310_v18  ;;  %v1706_v22 = vrot.slane %v232_v5, %v4313_v19  ;;  %v1713_v23 = vrot.slane %v232_v5, %v4316_v20 }
  0x9f   :  { %v2439_v31 = vcombine.low %v2431_v9, %v2438_v10  ;;  %v2696_v33 = vcombine.low %v1286_v6, %v1293_v7  ;;  %v2686_v36 = vrot.slane %v2678_v12, %v4327_v32  ;;  %v2693_v37 = vrot.slane %v2679_v13, %v4327_v32 }
  0xa0   :  { %v142_v15 = vpop.xlane.xlu1 %141  ;;  %v2703_v40 = vrot.slane %v2695_v14, %v4327_v32  ;;  %v2950_v41 = vcombine.low %v1692_v16, %v1699_v21  ;;  %v2951_v42 = vcombine.low %v1706_v22, %v1713_v23  ;;  %v1734_v51 = vrot.slane %v4349_v2, %v4313_v19 }
  0xa1   :  { %v4359_v24 = vpop.xlane.xlu0 %93  ;;  %v852_v25 = vrot.slane %v142_v15, %v4307_v17  ;;  %v859_v26 = vrot.slane %v142_v15, %v4310_v18  ;;  %v866_v27 = vrot.slane %v142_v15, %v4313_v19  ;;  %v873_v28 = vrot.slane %v142_v15, %v4316_v20 }
  0xa2   :  { %3271 = vperm.xlu1 %3994, %v2422_v8   ;;  %v2694_v49 = vcombine.low %v2686_v36, %v2693_v37  ;;  %v2710_v50 = vrot.slane %v2696_v33, %v4327_v32  ;;  %v1741_v52 = vrot.slane %v4349_v2, %v4316_v20  ;;  %v2967_v54 = vcombine.low %v1720_v29, %v1727_v30 }
  0xa3   :  { %v2440_v34 = vcombine.low %v852_v25, %v859_v26  ;;  %v2441_v35 = vcombine.low %v866_v27, %v873_v28  ;;  %v2958_v59 = vrot.slane %v2950_v41, %v4327_v32  ;;  %v2965_v60 = vrot.slane %v2951_v42, %v4327_v32 }
  0xa4   :  { %v238_v38 = vpop.xlane.xlu1 %237  ;;  %v2711_v4 = vcombine.low %v2703_v40, %v2710_v50  ;;  %v404_v5 = vrot.slane %v4359_v24, %v4307_v17  ;;  %v411_v6 = vrot.slane %v4359_v24, %v4310_v18  ;;  %v2968_v8 = vcombine.low %v1734_v51, %v1741_v52 }
  0xa5   :  { %v4371_v39 = vpop.xlane.xlu0 %189  ;;  %v1748_v43 = vrot.slane %v238_v38, %v4307_v17  ;;  %v1755_v44 = vrot.slane %v238_v38, %v4310_v18  ;;  %v1762_v45 = vrot.slane %v238_v38, %v4313_v19  ;;  %v1769_v46 = vrot.slane %v238_v38, %v4316_v20 }
  0xa6   :  { %3274 = vperm.xlu1 %3994, %v2439_v31   ;;  %v2448_v47 = vrot.slane %v2440_v34, %v4327_v32  ;;  %v2455_v48 = vrot.slane %v2441_v35, %v4327_v32  ;;  %v418_v9 = vrot.slane %v4359_v24, %v4313_v19  ;;  %v425_v10 = vrot.slane %v4359_v24, %v4316_v20 }
  0xa7   :  { %v2984_v53 = vcombine.low %v1748_v43, %v1755_v44  ;;  %v2985_v57 = vcombine.low %v1762_v45, %v1769_v46  ;;  %v2966_v24 = vcombine.low %v2958_v59, %v2965_v60  ;;  %v1300_v27 = vrot.slane %v4371_v39, %v4307_v17 }
  0xa8   :  { %v145_v55 = vpop.xlane.xlu1 %144  ;;  %v2456_v56 = vcombine.low %v2448_v47, %v2455_v48  ;;  %v2975_v29 = vrot.slane %v2967_v54, %v4327_v32  ;;  %v2982_v30 = vrot.slane %v2968_v8, %v4327_v32  ;;  %v1307_v31 = vrot.slane %v4371_v39, %v4310_v18 }
  0xa9   :  { %v4385_v58 = vpop.xlane.xlu0 %96  ;;  %v880_v61 = vrot.slane %v145_v55, %v4307_v17  ;;  %v887_v62 = vrot.slane %v145_v55, %v4310_v18  ;;  %v894_v63 = vrot.slane %v145_v55, %v4313_v19  ;;  %v901_v0 = vrot.slane %v145_v55, %v4316_v20 }
  0xaa   :  { %3277 = vperm.xlu0 %3993, %v2456_v56   ;;  %3319 = vperm.xlu1 %3994, %v2694_v49   ;;  %v2992_v1 = vrot.slane %v2984_v53, %v4327_v32  ;;  %v2999_v2 = vrot.slane %v2985_v57, %v4327_v32  ;;  %v2168_v37 = vcombine.low %v404_v5, %v411_v6 }
  0xab   :  { %v2457_v7 = vcombine.low %v880_v61, %v887_v62  ;;  %v2458_v14 = vcombine.low %v894_v63, %v901_v0  ;;  %v1314_v43 = vrot.slane %v4371_v39, %v4313_v19  ;;  %v1321_v46 = vrot.slane %v4371_v39, %v4316_v20 }
  0xac   :  { %v241_v12 = vpop.xlane.xlu1 %240  ;;  %v3000_v13 = vcombine.low %v2992_v1, %v2999_v2  ;;  %v432_v47 = vrot.slane %v4385_v58, %v4307_v17  ;;  %v2983_v48 = vcombine.low %v2975_v29, %v2982_v30  ;;  %v2169_v53 = vcombine.low %v418_v9, %v425_v10 }
  0xad   :  { %v4403_v15 = vpop.xlane.xlu0 %192  ;;  %v1776_v16 = vrot.slane %v241_v12, %v4307_v17  ;;  %v1783_v21 = vrot.slane %v241_v12, %v4310_v18  ;;  %v1790_v22 = vrot.slane %v241_v12, %v4313_v19  ;;  %v1797_v23 = vrot.slane %v241_v12, %v4316_v20 }
  0xae   :  { %3373 = vperm.xlu0 %3993, %v3000_v13   ;;  %3322 = vperm.xlu1 %3994, %v2711_v4   ;;  %v2465_v25 = vrot.slane %v2457_v7, %v4327_v32  ;;  %v2472_v26 = vrot.slane %v2458_v14, %v4327_v32  ;;  %v2176_v54 = vrot.slane %v2168_v37, %v4327_v32 }
  0xaf   :  { %v3001_v28 = vcombine.low %v1776_v16, %v1783_v21  ;;  %v3002_v35 = vcombine.low %v1790_v22, %v1797_v23  ;;  %v2183_v62 = vrot.slane %v2169_v53, %v4327_v32  ;;  %v439_v63 = vrot.slane %v4385_v58, %v4310_v18 }
  0xb0   :  { %v148_v33 = vpop.xlane.xlu1 %147  ;;  %v2473_v34 = vcombine.low %v2465_v25, %v2472_v26  ;;  %v446_v0 = vrot.slane %v4385_v58, %v4313_v19  ;;  %v453_v1 = vrot.slane %v4385_v58, %v4316_v20  ;;  %v1328_v2 = vrot.slane %v4403_v15, %v4307_v17 }
  0xb1   :  { %v4417_v36 = vpop.xlane.xlu0 %99  ;;  %v908_v38 = vrot.slane %v148_v33, %v4307_v17  ;;  %v915_v40 = vrot.slane %v148_v33, %v4310_v18  ;;  %v922_v41 = vrot.slane %v148_v33, %v4313_v19  ;;  %v929_v42 = vrot.slane %v148_v33, %v4316_v20 }
  0xb2   :  { %3280 = vperm.xlu0 %3993, %v2473_v34   ;;  %3367 = vperm.xlu1 %3994, %v2966_v24   ;;  %v3009_v44 = vrot.slane %v3001_v28, %v4327_v32  ;;  %v3016_v45 = vrot.slane %v3002_v35, %v4327_v32  ;;  %v2184_v6 = vcombine.low %v2176_v54, %v2183_v62 }
  0xb3   :  { %v2474_v49 = vcombine.low %v908_v38, %v915_v40  ;;  %v2475_v52 = vcombine.low %v922_v41, %v929_v42  ;;  %v2712_v21 = vcombine.low %v1300_v27, %v1307_v31  ;;  %v1335_v22 = vrot.slane %v4403_v15, %v4310_v18 }
  0xb4   :  { %v244_v50 = vpop.xlane.xlu1 %243  ;;  %v3017_v51 = vcombine.low %v3009_v44, %v3016_v45  ;;  %v1342_v23 = vrot.slane %v4403_v15, %v4313_v19  ;;  %v1349_v25 = vrot.slane %v4403_v15, %v4316_v20  ;;  %v2713_v26 = vcombine.low %v1314_v43, %v1321_v46 }
  0xb5   :  { %v4432_v55 = vpop.xlane.xlu0 %195  ;;  %v1804_v56 = vrot.slane %v244_v50, %v4307_v17  ;;  %v1811_v57 = vrot.slane %v244_v50, %v4310_v18  ;;  %v1818_v59 = vrot.slane %v244_v50, %v4313_v19  ;;  %v1825_v39 = vrot.slane %v244_v50, %v4316_v20 }
  0xb6   :  { %3376 = vperm.xlu0 %3993, %v3017_v51   ;;  %3370 = vperm.xlu1 %3994, %v2983_v48   ;;  %v2482_v60 = vrot.slane %v2474_v49, %v4327_v32  ;;  %v2489_v61 = vrot.slane %v2475_v52, %v4327_v32  ;;  %v460_v24 = vrot.slane %v4417_v36, %v4307_v17 }
  0xb7   :  { %v3018_v7 = vcombine.low %v1804_v56, %v1811_v57  ;;  %v3019_v8 = vcombine.low %v1818_v59, %v1825_v39  ;;  %v2720_v30 = vrot.slane %v2712_v21, %v4327_v32  ;;  %v2727_v15 = vrot.slane %v2713_v26, %v4327_v32 }
  0xb8   :  { %v151_v4 = vpop.xlane.xlu1 %150  ;;  %v2490_v5 = vcombine.low %v2482_v60, %v2489_v61  ;;  %v2185_v41 = vcombine.low %v432_v47, %v439_v63  ;;  %v467_v42 = vrot.slane %v4417_v36, %v4310_v18  ;;  %v474_v43 = vrot.slane %v4417_v36, %v4313_v19 }
  0xb9   :  { %v4449_v9 = vpop.xlane.xlu0 %102  ;;  %v936_v10 = vrot.slane %v151_v4, %v4307_v17  ;;  %v943_v12 = vrot.slane %v151_v4, %v4310_v18  ;;  %v950_v13 = vrot.slane %v151_v4, %v4313_v19  ;;  %v957_v14 = vrot.slane %v151_v4, %v4316_v20 }
  0xba   :  { %3283 = vperm.xlu0 %3993, %v2490_v5   ;;  %3229 = vperm.xlu1 %3994, %v2184_v6   ;;  %v3026_v58 = vrot.slane %v3018_v7, %v4327_v32  ;;  %v3033_v16 = vrot.slane %v3019_v8, %v4327_v32  ;;  %v481_v44 = vrot.slane %v4417_v36, %v4316_v20 }
  0xbb   :  { %v2491_v33 = vcombine.low %v936_v10, %v943_v12  ;;  %v2492_v38 = vcombine.low %v950_v13, %v957_v14  ;;  %v2186_v45 = vcombine.low %v446_v0, %v453_v1  ;;  %v1356_v46 = vrot.slane %v4432_v55, %v4307_v17 }
  0xbc   :  { %v247_v28 = vpop.xlane.xlu1 %246  ;;  %v3034_v29 = vcombine.low %v3026_v58, %v3033_v16  ;;  %v2728_v48 = vcombine.low %v2720_v30, %v2727_v15  ;;  %v2193_v51 = vrot.slane %v2185_v41, %v4327_v32  ;;  %v1363_v52 = vrot.slane %v4432_v55, %v4310_v18 }
  0xbd   :  { %v4466_v34 = vpop.xlane.xlu0 %198  ;;  %v1832_v27 = vrot.slane %v247_v28, %v4307_v17  ;;  %v1839_v31 = vrot.slane %v247_v28, %v4310_v18  ;;  %v1846_v35 = vrot.slane %v247_v28, %v4313_v19  ;;  %v1853_v37 = vrot.slane %v247_v28, %v4316_v20 }
  0xbe   :  { %3379 = vperm.xlu0 %3993, %v3034_v29   ;;  %v2499_v40 = vrot.slane %v2491_v33, %v4327_v32  ;;  %v2506_v50 = vrot.slane %v2492_v38, %v4327_v32  ;;  %v1370_v53 = vrot.slane %v4432_v55, %v4313_v19  ;;  %3325 = vperm.xlu1 %3994, %v2728_v48  }
  0xbf   :  { %v2200_v57 = vrot.slane %v2186_v45, %v4327_v32  ;;  %v3035_v59 = vcombine.low %v1832_v27, %v1839_v31  ;;  %v3036_v39 = vcombine.low %v1846_v35, %v1853_v37  ;;  %v2729_v62 = vcombine.low %v1328_v2, %v1335_v22 }
  0xc0   :  { %v154_v49 = vpop.xlane.xlu1 %153  ;;  %v2507_v56 = vcombine.low %v2499_v40, %v2506_v50  ;;  %v2730_v63 = vcombine.low %v1342_v23, %v1349_v25  ;;  %v1377_v0 = vrot.slane %v4432_v55, %v4316_v20  ;;  %v488_v8 = vrot.slane %v4449_v9, %v4307_v17 }
  0xc1   :  { %v4484_v47 = vpop.xlane.xlu0 %105  ;;  %v964_v36 = vrot.slane %v154_v49, %v4307_v17  ;;  %v971_v54 = vrot.slane %v154_v49, %v4310_v18  ;;  %v978_v60 = vrot.slane %v154_v49, %v4313_v19  ;;  %v985_v61 = vrot.slane %v154_v49, %v4316_v20 }
  0xc2   :  { %3286 = vperm.xlu0 %3993, %v2507_v56   ;;  %v2201_v1 = vcombine.low %v2193_v51, %v2200_v57  ;;  %v3043_v5 = vrot.slane %v3035_v59, %v4327_v32  ;;  %v3050_v6 = vrot.slane %v3036_v39, %v4327_v32  ;;  %v495_v10 = vrot.slane %v4449_v9, %v4310_v18 }
  0xc3   :  { %v502_v2 = vrot.slane %v4449_v9, %v4313_v19  ;;  %v509_v12 = vrot.slane %v4449_v9, %v4316_v20  ;;  %v2737_v58 = vrot.slane %v2729_v62, %v4327_v32  ;;  %v2744_v16 = vrot.slane %v2730_v63, %v4327_v32 }
  0xc4   :  { %v250_v4 = vpop.xlane.xlu1 %249  ;;  %3232 = vperm.xlu1 %3994, %v2201_v1   ;;  %v3051_v14 = vcombine.low %v3043_v5, %v3050_v6  ;;  %v2508_v22 = vcombine.low %v964_v36, %v971_v54  ;;  %v2509_v23 = vcombine.low %v978_v60, %v985_v61  ;;  %v2202_v25 = vcombine.low %v460_v24, %v467_v42 }
  0xc5   :  { %v4499_v7 = vpop.xlane.xlu0 %201  ;;  %v1860_v13 = vrot.slane %v250_v4, %v4307_v17  ;;  %v1867_v21 = vrot.slane %v250_v4, %v4310_v18  ;;  %v1874_v26 = vrot.slane %v250_v4, %v4313_v19  ;;  %v1881_v28 = vrot.slane %v250_v4, %v4316_v20 }
  0xc6   :  { %3382 = vperm.xlu0 %3993, %v3051_v14   ;;  %v2745_v29 = vcombine.low %v2737_v58, %v2744_v16  ;;  %v2203_v33 = vcombine.low %v474_v43, %v481_v44  ;;  %v1384_v31 = vrot.slane %v4466_v34, %v4307_v17  ;;  %v1391_v35 = vrot.slane %v4466_v34, %v4310_v18 }
  0xc7   :  { %v1398_v37 = vrot.slane %v4466_v34, %v4313_v19  ;;  %v516_v24 = vrot.slane %v4484_v47, %v4307_v17  ;;  %v2516_v15 = vrot.slane %v2508_v22, %v4327_v32  ;;  %v2523_v38 = vrot.slane %v2509_v23, %v4327_v32 }
  0xc8   :  { %v157_v30 = vpop.xlane.xlu1 %156  ;;  %3328 = vperm.xlu1 %3994, %v2745_v29   ;;  %v2210_v40 = vrot.slane %v2202_v25, %v4327_v32  ;;  %v2217_v41 = vrot.slane %v2203_v33, %v4327_v32  ;;  %v523_v44 = vrot.slane %v4484_v47, %v4310_v18  ;;  %v3052_v45 = vcombine.low %v1860_v13, %v1867_v21 }
  0xc9   :  { %v4515_v27 = vpop.xlane.xlu0 %108  ;;  %v992_v42 = vrot.slane %v157_v30, %v4307_v17  ;;  %v999_v43 = vrot.slane %v157_v30, %v4310_v18  ;;  %v2524_v48 = vcombine.low %v2516_v15, %v2523_v38  ;;  %v3053_v51 = vcombine.low %v1874_v26, %v1881_v28 }
  0xca   :  { %v2218_v49 = vcombine.low %v2210_v40, %v2217_v41  ;;  %v2746_v36 = vcombine.low %v1356_v46, %v1363_v52  ;;  %v1405_v56 = vrot.slane %v4466_v34, %v4316_v20  ;;  %v530_v57 = vrot.slane %v4484_v47, %v4313_v19 }
  0xcb   :  { %v537_v59 = vrot.slane %v4484_v47, %v4316_v20  ;;  %v1412_v39 = vrot.slane %v4499_v7, %v4307_v17  ;;  %v1006_v60 = vrot.slane %v157_v30, %v4313_v19  ;;  %3289 = vperm.xlu0 %3993, %v2524_v48   ;;  %v1419_v46 = vrot.slane %v4499_v7, %v4310_v18 }
  0xcc   :  { %v253_v50 = vpop.xlane.xlu1 %252  ;;  %3235 = vperm.xlu1 %3994, %v2218_v49   ;;  %v3060_v52 = vrot.slane %v3052_v45, %v4327_v32  ;;  %v1013_v61 = vrot.slane %v157_v30, %v4316_v20  ;;  %v3067_v62 = vrot.slane %v3053_v51, %v4327_v32  ;;  %v2747_v47 = vcombine.low %v1370_v53, %v1377_v0 }
  0xcd   :  { %v4536_v54 = vpop.xlane.xlu0 %204  ;;  %v2754_v63 = vrot.slane %v2746_v36, %v4327_v32  ;;  %v4556_v1 = vcombine.low %v516_v24, %v523_v44  ;;  %v1426_v4 = vrot.slane %v4499_v7, %v4313_v19  ;;  %v1433_v5 = vrot.slane %v4499_v7, %v4316_v20 }
  0xce   :  { %v2525_v13 = vcombine.low %v992_v42, %v999_v43  ;;  %v4566_v58 = vcombine.low %v530_v57, %v537_v59  ;;  %v1888_v55 = vrot.slane %v253_v50, %v4307_v17  ;;  %v3068_v53 = vcombine.low %v3060_v52, %v3067_v62 }
  0xcf   :  { %v2761_v0 = vrot.slane %v2747_v47, %v4327_v32  ;;  %v1895_v16 = vrot.slane %v253_v50, %v4310_v18  ;;  %v1902_v21 = vrot.slane %v253_v50, %v4313_v19  ;;  %v1909_v22 = vrot.slane %v253_v50, %v4316_v20 }
  0xd0   :  { %v4562_v6 = vpop.xlane.xlu1 %159  ;;  %v4573_v23 = vcombine.low %v1412_v39, %v1419_v46  ;;  %3385 = vperm.xlu0 %3993, %v3068_v53   ;;  %v2526_v25 = vcombine.low %v1006_v60, %v1013_v61  ;;  %v2533_v26 = vrot.slane %v2525_v13, %v4327_v32  ;;  %v2219_v28 = vcombine.low %v488_v8, %v495_v10 }
  0xd1   :  { %v4564_v14 = vpop.xlane.xlu0 %111  ;;  %v2762_v7 = vcombine.low %v2754_v63, %v2761_v0  ;;  %v4582_v29 = vcombine.low %v1426_v4, %v1433_v5  ;;  %v544_v30 = vrot.slane %v4515_v27, %v4307_v17  ;;  %v551_v33 = vrot.slane %v4515_v27, %v4310_v18 }
  0xd2   :  { %v2220_v24 = vcombine.low %v502_v2, %v509_v12  ;;  %v558_v8 = vrot.slane %v4515_v27, %v4313_v19  ;;  %v565_v10 = vrot.slane %v4515_v27, %v4316_v20  ;;  %v2540_v40 = vrot.slane %v2526_v25, %v4327_v32 }
  0xd3   :  { %3331 = vperm.xlu1 %3994, %v2762_v7   ;;  %v2227_v41 = vrot.slane %v2219_v28, %v4327_v32  ;;  %v1020_v42 = vrot.slane %v4562_v6, %v4307_v17  ;;  %v1027_v9 = vrot.slane %v4562_v6, %v4310_v18  ;;  %v1034_v2 = vrot.slane %v4562_v6, %v4313_v19 }
  0xd4   :  { %v4594_v15 = vpop.xlane.xlu1 %255  ;;  %v2234_v12 = vrot.slane %v2220_v24, %v4327_v32  ;;  %v1041_v43 = vrot.slane %v4562_v6, %v4316_v20  ;;  %v2541_v44 = vcombine.low %v2533_v26, %v2540_v40  ;;  %v3069_v27 = vcombine.low %v1888_v55, %v1895_v16 }
  0xd5   :  { %v4596_v38 = vpop.xlane.xlu0 %207  ;;  %v3070_v45 = vcombine.low %v1902_v21, %v1909_v22  ;;  %v4613_v48 = vcombine.low %v544_v30, %v551_v33  ;;  %v2763_v50 = vcombine.low %v1384_v31, %v1391_v35  ;;  %v2764_v51 = vcombine.low %v1398_v37, %v1405_v56 }
  0xd6   :  { %v2235_v49 = vcombine.low %v2227_v41, %v2234_v12  ;;  %v4626_v59 = vcombine.low %v558_v8, %v565_v10  ;;  %3292 = vperm.xlu0 %3993, %v2541_v44   ;;  %v1440_v39 = vrot.slane %v4536_v54, %v4307_v17  ;;  %v3077_v60 = vrot.slane %v3069_v27, %v4327_v32 }
  0xd7   :  { %v3084_v46 = vrot.slane %v3070_v45, %v4327_v32  ;;  %v1447_v31 = vrot.slane %v4536_v54, %v4310_v18  ;;  %v1454_v34 = vrot.slane %v4536_v54, %v4313_v19  ;;  %v2771_v35 = vrot.slane %v2763_v50, %v4327_v32 }
  0xd8   :  { %v163_v36 = vpop.xlane.xlu1 %162  ;;  %3238 = vperm.xlu1 %3994, %v2235_v49   ;;  %v2778_v37 = vrot.slane %v2764_v51, %v4327_v32  ;;  %v1461_v56 = vrot.slane %v4536_v54, %v4316_v20  ;;  %v1916_v47 = vrot.slane %v4594_v15, %v4307_v17  ;;  %v1923_v55 = vrot.slane %v4594_v15, %v4310_v18 }
  0xd9   :  { %v4624_v57 = vpop.xlane.xlu0 %114  ;;  %v3085_v52 = vcombine.low %v3077_v60, %v3084_v46  ;;  %v1048_v61 = vrot.slane %v163_v36, %v4307_v17  ;;  %v1055_v62 = vrot.slane %v163_v36, %v4310_v18  ;;  %v1062_v4 = vrot.slane %v163_v36, %v4313_v19 }
  0xda   :  { %v2779_v63 = vcombine.low %v2771_v35, %v2778_v37  ;;  %v1069_v5 = vrot.slane %v163_v36, %v4316_v20  ;;  %v2542_v54 = vcombine.low %v1020_v42, %v1027_v9  ;;  %v2543_v53 = vcombine.low %v1034_v2, %v1041_v43 }
  0xdb   :  { %3388 = vperm.xlu0 %3993, %v3085_v52   ;;  %v2244_v0 = vrot.slane %v4556_v1, %v4327_v32  ;;  %v1930_v16 = vrot.slane %v4594_v15, %v4313_v19  ;;  %v1937_v21 = vrot.slane %v4594_v15, %v4316_v20  ;;  %v4656_v22 = vcombine.low %v1440_v39, %v1447_v31 }
  0xdc   :  { %v259_v6 = vpop.xlane.xlu1 %258  ;;  %3334 = vperm.xlu1 %3994, %v2779_v63   ;;  %v2251_v7 = vrot.slane %v4566_v58, %v4327_v32  ;;  %v4660_v25 = vcombine.low %v1454_v34, %v1461_v56  ;;  %v2559_v26 = vcombine.low %v1048_v61, %v1055_v62  ;;  %v2550_v28 = vrot.slane %v2542_v54, %v4327_v32 }
  0xdd   :  { %v4646_v13 = vpop.xlane.xlu0 %210  ;;  %v2557_v30 = vrot.slane %v2543_v53, %v4327_v32  ;;  %v2560_v1 = vcombine.low %v1062_v4, %v1069_v5  ;;  %v572_v33 = vrot.slane %v4564_v14, %v4307_v17  ;;  %v579_v24 = vrot.slane %v4564_v14, %v4310_v18 }
  0xde   :  { %v2252_v15 = vcombine.low %v2244_v0, %v2251_v7  ;;  %v586_v58 = vrot.slane %v4564_v14, %v4313_v19  ;;  %v593_v40 = vrot.slane %v4564_v14, %v4316_v20  ;;  %v1944_v42 = vrot.slane %v259_v6, %v4307_v17 }
  0xdf   :  { %v2558_v41 = vcombine.low %v2550_v28, %v2557_v30  ;;  %v1951_v9 = vrot.slane %v259_v6, %v4310_v18  ;;  %v3086_v2 = vcombine.low %v1916_v47, %v1923_v55  ;;  %v3087_v12 = vcombine.low %v1930_v16, %v1937_v21 }
  0xe0   :  { %v166_v8 = vpop.xlane.xlu1 %165  ;;  %3241 = vperm.xlu1 %3994, %v2252_v15   ;;  %v2788_v43 = vrot.slane %v4573_v23, %v4327_v32  ;;  %v1958_v44 = vrot.slane %v259_v6, %v4313_v19  ;;  %v1965_v27 = vrot.slane %v259_v6, %v4316_v20  ;;  %v1468_v45 = vrot.slane %v4596_v38, %v4307_v17 }
  0xe1   :  { %v4668_v10 = vpop.xlane.xlu0 %117  ;;  %3295 = vperm.xlu0 %3993, %v2558_v41   ;;  %v2795_v14 = vrot.slane %v4582_v29, %v4327_v32  ;;  %v1475_v49 = vrot.slane %v4596_v38, %v4310_v18  ;;  %v1482_v50 = vrot.slane %v4596_v38, %v4313_v19  ;;  %v3094_v51 = vrot.slane %v3086_v2, %v4327_v32 }
  0xe2   :  { %v3101_v23 = vrot.slane %v3087_v12, %v4327_v32  ;;  %v1489_v60 = vrot.slane %v4596_v38, %v4316_v20  ;;  %v1076_v29 = vrot.slane %v166_v8, %v4307_v17  ;;  %v1083_v31 = vrot.slane %v166_v8, %v4310_v18 }
  0xe3   :  { %v2796_v46 = vcombine.low %v2788_v43, %v2795_v14  ;;  %v3103_v34 = vcombine.low %v1944_v42, %v1951_v9  ;;  %v1090_v37 = vrot.slane %v166_v8, %v4313_v19  ;;  %v1097_v56 = vrot.slane %v166_v8, %v4316_v20 }
  0xe4   :  { %v4690_v36 = vpop.xlane.xlu1 %261  ;;  %v3102_v35 = vcombine.low %v3094_v51, %v3101_v23  ;;  %v3104_v52 = vcombine.low %v1958_v44, %v1965_v27  ;;  %v2567_v61 = vrot.slane %v2559_v26, %v4327_v32  ;;  %v2574_v62 = vrot.slane %v2560_v1, %v4327_v32 }
  0xe5   :  { %v4692_v39 = vpop.xlane.xlu0 %213  ;;  %3337 = vperm.xlu1 %3994, %v2796_v46   ;;  %v2261_v38 = vrot.slane %v4613_v48, %v4327_v32  ;;  %v2270_v47 = vcombine.low %v572_v33, %v579_v24  ;;  %v2271_v63 = vcombine.low %v586_v58, %v593_v40  ;;  %v4704_v4 = vcombine.low %v1468_v45, %v1475_v49 }
  0xe6   :  { %3391 = vperm.xlu0 %3993, %v3102_v35   ;;  %v2268_v5 = vrot.slane %v4626_v59, %v4327_v32  ;;  %v4710_v54 = vcombine.low %v1482_v50, %v1489_v60  ;;  %v2576_v53 = vcombine.low %v1076_v29, %v1083_v31  ;;  %v600_v0 = vrot.slane %v4624_v57, %v4307_v17 }
  0xe7   :  { %v2575_v16 = vcombine.low %v2567_v61, %v2574_v62  ;;  %v2577_v21 = vcombine.low %v1090_v37, %v1097_v56  ;;  %v607_v48 = vrot.slane %v4624_v57, %v4310_v18  ;;  %v614_v7 = vrot.slane %v4624_v57, %v4313_v19 }
  0xe8   :  { %v169_v6 = vpop.xlane.xlu1 %168  ;;  %v2269_v26 = vcombine.low %v2261_v38, %v2268_v5  ;;  %v1972_v59 = vrot.slane %v4690_v36, %v4307_v17  ;;  %v1979_v28 = vrot.slane %v4690_v36, %v4310_v18  ;;  %v3111_v30 = vrot.slane %v3103_v34, %v4327_v32 }
  0xe9   :  { %v4708_v55 = vpop.xlane.xlu0 %120  ;;  %v3118_v1 = vrot.slane %v3104_v52, %v4327_v32  ;;  %v621_v33 = vrot.slane %v4624_v57, %v4316_v20  ;;  %v2805_v24 = vrot.slane %v4656_v22, %v4327_v32  ;;  %v2812_v15 = vrot.slane %v4660_v25, %v4327_v32 }
  0xea   :  { %3298 = vperm.xlu0 %3993, %v2575_v16   ;;  %3244 = vperm.xlu1 %3994, %v2269_v26   ;;  %v4733_v40 = vand.u32 127, %v345_v3  ;;  %v1986_v41 = vrot.slane %v4690_v36, %v4313_v19  ;;  %v1993_v57 = vrot.slane %v4690_v36, %v4316_v20  ;;  %v1496_v42 = vrot.slane %v4646_v13, %v4307_v17 }
  0xeb   :  { %v3119_v9 = vcombine.low %v3111_v30, %v3118_v1  ;;  %v1503_v22 = vrot.slane %v4646_v13, %v4310_v18  ;;  %v1510_v25 = vrot.slane %v4646_v13, %v4313_v19  ;;  %v1517_v3 = vrot.slane %v4646_v13, %v4316_v20 }
  0xec   :  { %v265_v8 = vpop.xlane.xlu1 %264  ;;  %v2813_v2 = vcombine.low %v2805_v24, %v2812_v15  ;;  %v3120_v12 = vcombine.low %v1972_v59, %v1979_v28  ;;  %v1104_v43 = vrot.slane %v169_v6, %v4307_v17  ;;  %v1111_v44 = vrot.slane %v169_v6, %v4310_v18 }
  0xed   :  { %v4730_v58 = vpop.xlane.xlu0 %216  ;;  %v1118_v27 = vrot.slane %v169_v6, %v4313_v19  ;;  %v1125_v45 = vrot.slane %v169_v6, %v4316_v20  ;;  %v2584_v14 = vrot.slane %v2576_v53, %v4327_v32  ;;  %v2591_v49 = vrot.slane %v2577_v21, %v4327_v32 }
  0xee   :  { %3394 = vperm.xlu0 %3993, %v3119_v9   ;;  %3340 = vperm.xlu1 %3994, %v2813_v2   ;;  %v4758_v13 = vadd.s32 4294967288, %v4733_v40  ;;  %v2287_v23 = vcombine.low %v600_v0, %v607_v48  ;;  %v3121_v36 = vcombine.low %v1986_v41, %v1993_v57  ;;  %v2278_v60 = vrot.slane %v2270_v47, %v4327_v32 }
  0xef   :  { %v2285_v46 = vrot.slane %v2271_v63, %v4327_v32  ;;  %v2288_v29 = vcombine.low %v614_v7, %v621_v33  ;;  %v4762_v31 = vcombine.low %v1496_v42, %v1503_v22  ;;  %v4764_v34 = vcombine.low %v1510_v25, %v1517_v3 }
  0xf0   :  { %v4753_v50 = vpop.xlane.xlu1 %171  ;;  %v2592_v35 = vcombine.low %v2584_v14, %v2591_v49  ;;  %v2593_v37 = vcombine.low %v1104_v43, %v1111_v44  ;;  %v628_v56 = vrot.slane %v4668_v10, %v4307_v17  ;;  %v635_v52 = vrot.slane %v4668_v10, %v4310_v18 }
  0xf1   :  { %v4755_v51 = vpop.xlane.xlu0 %123  ;;  %v2286_v61 = vcombine.low %v2278_v60, %v2285_v46  ;;  %v2594_v62 = vcombine.low %v1118_v27, %v1125_v45  ;;  %v2000_v38 = vrot.slane %v265_v8, %v4307_v17  ;;  %v2007_v47 = vrot.slane %v265_v8, %v4310_v18 }
  0xf2   :  { %3301 = vperm.xlu0 %3993, %v2592_v35   ;;  %v3128_v63 = vrot.slane %v3120_v12, %v4327_v32  ;;  %v2014_v6 = vrot.slane %v265_v8, %v4313_v19  ;;  %v2021_v53 = vrot.slane %v265_v8, %v4316_v20  ;;  %v3135_v0 = vrot.slane %v3121_v36, %v4327_v32 }
  0xf3   :  { %3247 = vperm.xlu1 %3994, %v2286_v61   ;;  %v2822_v16 = vrot.slane %v4704_v4, %v4327_v32  ;;  %v642_v21 = vrot.slane %v4668_v10, %v4313_v19  ;;  %v649_v48 = vrot.slane %v4668_v10, %v4316_v20  ;;  %v1524_v7 = vrot.slane %v4692_v39, %v4307_v17 }
  0xf4   :  { %v4773_v5 = vpop.xlane.xlu1 %267  ;;  %v2829_v26 = vrot.slane %v4710_v54, %v4327_v32  ;;  %v1531_v28 = vrot.slane %v4692_v39, %v4310_v18  ;;  %v1538_v4 = vrot.slane %v4692_v39, %v4313_v19  ;;  %v1545_v30 = vrot.slane %v4692_v39, %v4316_v20 }
  0xf5   :  { %v4788_v59 = vpop.xlane.xlu0 %219  ;;  %v3136_v1 = vcombine.low %v3128_v63, %v3135_v0  ;;  %v4796_v33 = vcombine.low %v628_v56, %v635_v52  ;;  %v1132_v24 = vrot.slane %v4753_v50, %v4307_v17  ;;  %v1139_v54 = vrot.slane %v4753_v50, %v4310_v18 }
  0xf6   :  { %v2830_v10 = vcombine.low %v2822_v16, %v2829_v26  ;;  %v3137_v8 = vcombine.low %v2000_v38, %v2007_v47  ;;  %v3138_v41 = vcombine.low %v2014_v6, %v2021_v53  ;;  %v2601_v57 = vrot.slane %v2593_v37, %v4327_v32 }
  0xf7   :  { %3397 = vperm.xlu0 %3993, %v3136_v1   ;;  %v2608_v42 = vrot.slane %v2594_v62, %v4327_v32  ;;  %v1146_v39 = vrot.slane %v4753_v50, %v4313_v19  ;;  %v1153_v9 = vrot.slane %v4753_v50, %v4316_v20  ;;  %v2295_v22 = vrot.slane %v2287_v23, %v4327_v32 }
  0xf8   :  { %v4802_v15 = vpop.xlane.xlu1 %174  ;;  %3343 = vperm.xlu1 %3994, %v2830_v10   ;;  %v2302_v25 = vrot.slane %v2288_v29, %v4327_v32  ;;  %v2305_v3 = vcombine.low %v642_v21, %v649_v48  ;;  %v4812_v2 = vcombine.low %v1524_v7, %v1531_v28  ;;  %v4814_v12 = vcombine.low %v1538_v4, %v1545_v30 }
  0xf9   :  { %v2609_v43 = vcombine.low %v2601_v57, %v2608_v42  ;;  %v2610_v44 = vcombine.low %v1132_v24, %v1139_v54  ;;  %v656_v27 = vrot.slane %v4708_v55, %v4307_v17  ;;  %v663_v45 = vrot.slane %v4708_v55, %v4310_v18  ;;  %v4822_v50 = vpop.xlane.xlu0 %126 }
  0xfa   :  { %v2303_v14 = vcombine.low %v2295_v22, %v2302_v25  ;;  %v670_v23 = vrot.slane %v4708_v55, %v4313_v19  ;;  %v2028_v36 = vrot.slane %v4773_v5, %v4307_v17  ;;  %v2035_v60 = vrot.slane %v4773_v5, %v4310_v18 }
  0xfb   :  { %3304 = vperm.xlu0 %3993, %v2609_v43   ;;  %v3145_v46 = vrot.slane %v3137_v8, %v4327_v32  ;;  %v2611_v29 = vcombine.low %v1146_v39, %v1153_v9  ;;  %v677_v35 = vrot.slane %v4708_v55, %v4316_v20  ;;  %v3152_v37 = vrot.slane %v3138_v41, %v4327_v32 }
  0xfc   :  { %v4820_v49 = vpop.xlane.xlu1 %270  ;;  %3250 = vperm.xlu1 %3994, %v2303_v14   ;;  %v2839_v56 = vrot.slane %v4762_v31, %v4327_v32  ;;  %v2042_v52 = vrot.slane %v4773_v5, %v4313_v19  ;;  %v2049_v61 = vrot.slane %v4773_v5, %v4316_v20  ;;  %v1552_v62 = vrot.slane %v4730_v58, %v4307_v17 }
  0xfd   :  { %v2846_v38 = vrot.slane %v4764_v34, %v4327_v32  ;;  %v1559_v55 = vrot.slane %v4730_v58, %v4310_v18  ;;  %v1566_v47 = vrot.slane %v4730_v58, %v4313_v19  ;;  %v1573_v31 = vrot.slane %v4730_v58, %v4316_v20  ;;  %v4862_v7 = vpop.xlane.xlu0 %222 }
  0xfe   :  { %v3153_v63 = vcombine.low %v3145_v46, %v3152_v37  ;;  %v3154_v6 = vcombine.low %v2028_v36, %v2035_v60  ;;  %v1160_v5 = vrot.slane %v4802_v15, %v4307_v17  ;;  %v1167_v0 = vrot.slane %v4802_v15, %v4310_v18 }
  0xff   :  { %v2847_v53 = vcombine.low %v2839_v56, %v2846_v38  ;;  %v1174_v34 = vrot.slane %v4802_v15, %v4313_v19  ;;  %v1181_v21 = vrot.slane %v4802_v15, %v4316_v20  ;;  %v2618_v58 = vrot.slane %v2610_v44, %v4327_v32 }
 0x100   :  { %v4854_v16 = vpop.xlane.xlu1 %177  ;;  %3400 = vperm.xlu0 %3993, %v3153_v63   ;;  %v2625_v48 = vrot.slane %v2611_v29, %v4327_v32  ;;  %v2321_v26 = vcombine.low %v656_v27, %v663_v45  ;;  %v3155_v28 = vcombine.low %v2042_v52, %v2049_v61  ;;  %v2312_v4 = vrot.slane %v4796_v33, %v4327_v32 }
 0x101   :  { %3346 = vperm.xlu1 %3994, %v2847_v53   ;;  %v2319_v30 = vrot.slane %v2305_v3, %v4327_v32  ;;  %v2322_v1 = vcombine.low %v670_v23, %v677_v35  ;;  %v4867_v10 = vcombine.low %v1552_v62, %v1559_v55  ;;  %v4869_v24 = vcombine.low %v1566_v47, %v1573_v31 }
 0x102   :  { %v2626_v54 = vcombine.low %v2618_v58, %v2625_v48  ;;  %v2627_v15 = vcombine.low %v1160_v5, %v1167_v0  ;;  %v684_v8 = vrot.slane %v4755_v51, %v4307_v17  ;;  %v691_v41 = vrot.slane %v4755_v51, %v4310_v18 }
 0x103   :  { %v2320_v57 = vcombine.low %v2312_v4, %v2319_v30  ;;  %v2628_v42 = vcombine.low %v1174_v34, %v1181_v21  ;;  %v2056_v33 = vrot.slane %v4820_v49, %v4307_v17  ;;  %v2063_v39 = vrot.slane %v4820_v49, %v4310_v18 }
 0x104   :  { %3307 = vperm.xlu0 %3993, %v2626_v54   ;;  %v3162_v9 = vrot.slane %v3154_v6, %v4327_v32  ;;  %v2070_v22 = vrot.slane %v4820_v49, %v4313_v19  ;;  %v2077_v25 = vrot.slane %v4820_v49, %v4316_v20  ;;  %v3169_v3 = vrot.slane %v3155_v28, %v4327_v32  ;;  %v4887_v44 = vpop.xlane.xlu1 %273  ;;  %v4897_v49 = vpop.xlane.xlu0 %129 }
 0x105   :  { %3253 = vperm.xlu1 %3994, %v2320_v57   ;;  %v2856_v43 = vrot.slane %v4812_v2, %v4327_v32  ;;  %v698_v27 = vrot.slane %v4755_v51, %v4313_v19  ;;  %v705_v45 = vrot.slane %v4755_v51, %v4316_v20  ;;  %v1580_v14 = vrot.slane %v4788_v59, %v4307_v17 }
 0x106   :  { %v2863_v23 = vrot.slane %v4814_v12, %v4327_v32  ;;  %v1587_v36 = vrot.slane %v4788_v59, %v4310_v18  ;;  %v1594_v2 = vrot.slane %v4788_v59, %v4313_v19  ;;  %v1601_v60 = vrot.slane %v4788_v59, %v4316_v20 }
 0x107   :  { %v3170_v46 = vcombine.low %v3162_v9, %v3169_v3  ;;  %v4905_v29 = vcombine.low %v684_v8, %v691_v41  ;;  %v1188_v35 = vrot.slane %v4854_v16, %v4307_v17  ;;  %v1195_v12 = vrot.slane %v4854_v16, %v4310_v18 }
 0x108   :  { %v2864_v51 = vcombine.low %v2856_v43, %v2863_v23  ;;  %v3171_v37 = vcombine.low %v2056_v33, %v2063_v39  ;;  %v3172_v56 = vcombine.low %v2070_v22, %v2077_v25  ;;  %v2635_v52 = vrot.slane %v2627_v15, %v4327_v32  ;;  %v181_v53 = vpop.xlane.xlu1 %180 }
 0x109   :  { %3403 = vperm.xlu0 %3993, %v3170_v46   ;;  %v2642_v61 = vrot.slane %v2628_v42, %v4327_v32  ;;  %v1202_v59 = vrot.slane %v4854_v16, %v4313_v19  ;;  %v1209_v62 = vrot.slane %v4854_v16, %v4316_v20  ;;  %v2329_v38 = vrot.slane %v2321_v26, %v4327_v32  ;;  %v4927_v16 = vpop.xlane.xlu0 %225 }
 0x10a   :  { %3349 = vperm.xlu1 %3994, %v2864_v51   ;;  %v2336_v55 = vrot.slane %v2322_v1, %v4327_v32  ;;  %v2339_v47 = vcombine.low %v698_v27, %v705_v45  ;;  %v4919_v31 = vcombine.low %v1580_v14, %v1587_v36  ;;  %v4921_v63 = vcombine.low %v1594_v2, %v1601_v60 }
 0x10b   :  { %v2643_v6 = vcombine.low %v2635_v52, %v2642_v61  ;;  %v2644_v5 = vcombine.low %v1188_v35, %v1195_v12  ;;  %v712_v0 = vrot.slane %v4822_v50, %v4307_v17  ;;  %v719_v34 = vrot.slane %v4822_v50, %v4310_v18 }
 0x10c   :  { %v2337_v21 = vcombine.low %v2329_v38, %v2336_v55  ;;  %v726_v58 = vrot.slane %v4822_v50, %v4313_v19  ;;  %v2084_v48 = vrot.slane %v4887_v44, %v4307_v17  ;;  %v2091_v26 = vrot.slane %v4887_v44, %v4310_v18  ;;  %v277_v3 = vpop.xlane.xlu1 %276 }
 0x10d   :  { %3310 = vperm.xlu0 %3993, %v2643_v6   ;;  %v3179_v28 = vrot.slane %v3171_v37, %v4327_v32  ;;  %v2645_v4 = vcombine.low %v1202_v59, %v1209_v62  ;;  %v733_v30 = vrot.slane %v4822_v50, %v4316_v20  ;;  %v3186_v1 = vrot.slane %v3172_v56, %v4327_v32  ;;  %v4961_v45 = vpop.xlane.xlu0 %132 }
 0x10e   :  { %3256 = vperm.xlu1 %3994, %v2337_v21   ;;  %v2873_v54 = vrot.slane %v4867_v10, %v4327_v32  ;;  %v2098_v15 = vrot.slane %v4887_v44, %v4313_v19  ;;  %v2105_v8 = vrot.slane %v4887_v44, %v4316_v20  ;;  %v1608_v41 = vrot.slane %v4862_v7, %v4307_v17 }
 0x10f   :  { %v2880_v57 = vrot.slane %v4869_v24, %v4327_v32  ;;  %v1615_v50 = vrot.slane %v4862_v7, %v4310_v18  ;;  %v3187_v42 = vcombine.low %v3179_v28, %v3186_v1  ;;  %v1216_v33 = vrot.slane %v181_v53, %v4307_v17 }
 0x110   :  { %v1223_v10 = vrot.slane %v181_v53, %v4310_v18  ;;  %v3188_v39 = vcombine.low %v2084_v48, %v2091_v26  ;;  %v1622_v9 = vrot.slane %v4862_v7, %v4313_v19  ;;  %v1629_v22 = vrot.slane %v4862_v7, %v4316_v20 }
 0x111   :  { %v2881_v25 = vcombine.low %v2873_v54, %v2880_v57  ;;  %3406 = vperm.xlu0 %3993, %v3187_v42   ;;  %v1230_v24 = vrot.slane %v181_v53, %v4313_v19  ;;  %v1237_v43 = vrot.slane %v181_v53, %v4316_v20  ;;  %v2652_v44 = vrot.slane %v2644_v5, %v4327_v32 }
 0x112   :  { %v2659_v27 = vrot.slane %v2645_v4, %v4327_v32  ;;  %v3189_v14 = vcombine.low %v2098_v15, %v2105_v8  ;;  %v740_v23 = vrot.slane %v4897_v49, %v4307_v17  ;;  %v2346_v7 = vrot.slane %v4905_v29, %v4327_v32 }
 0x113   :  { %3352 = vperm.xlu1 %3994, %v2881_v25   ;;  %v2353_v36 = vrot.slane %v2339_v47, %v4327_v32  ;;  %v2661_v2 = vcombine.low %v1216_v33, %v1223_v10  ;;  %v2112_v46 = vrot.slane %v277_v3, %v4307_v17  ;;  %v2119_v51 = vrot.slane %v277_v3, %v4310_v18 }
 0x114   :  { %v2660_v60 = vcombine.low %v2652_v44, %v2659_v27  ;;  %v747_v35 = vrot.slane %v4897_v49, %v4310_v18  ;;  %v2126_v37 = vrot.slane %v277_v3, %v4313_v19  ;;  %v2133_v56 = vrot.slane %v277_v3, %v4316_v20 }
 0x115   :  { %v2354_v12 = vcombine.low %v2346_v7, %v2353_v36  ;;  %v2355_v52 = vcombine.low %v712_v0, %v719_v34  ;;  %v2356_v61 = vcombine.low %v726_v58, %v733_v30  ;;  %v2662_v59 = vcombine.low %v1230_v24, %v1237_v43  ;;  %v229_v34 = vpop.xlane.xlu0 %228 }
 0x116   :  { %3313 = vperm.xlu0 %3993, %v2660_v60   ;;  %v3196_v29 = vrot.slane %v3188_v39, %v4327_v32  ;;  %v2899_v62 = vcombine.low %v1608_v41, %v1615_v50  ;;  %v2900_v38 = vcombine.low %v1622_v9, %v1629_v22  ;;  %v3203_v55 = vrot.slane %v3189_v14, %v4327_v32 }
 0x117   :  { %3259 = vperm.xlu1 %3994, %v2354_v12   ;;  %v2890_v47 = vrot.slane %v4919_v31, %v4327_v32  ;;  %v754_v6 = vrot.slane %v4897_v49, %v4313_v19  ;;  %v761_v53 = vrot.slane %v4897_v49, %v4316_v20  ;;  %v3205_v5 = vcombine.low %v2112_v46, %v2119_v51 }
 0x118   :  { %v2897_v0 = vrot.slane %v4921_v63, %v4327_v32  ;;  %v2372_v21 = vcombine.low %v740_v23, %v747_v35  ;;  %v3206_v58 = vcombine.low %v2126_v37, %v2133_v56  ;;  %v3204_v48 = vcombine.low %v3196_v29, %v3203_v55 }
 0x119   :  { %v2669_v26 = vrot.slane %v2661_v2, %v4327_v32  ;;  %v1636_v31 = vrot.slane %v4927_v16, %v4307_v17  ;;  %v2676_v4 = vrot.slane %v2662_v59, %v4327_v32  ;;  %v2363_v30 = vrot.slane %v2355_v52, %v4327_v32 }
 0x11a   :  { %v2898_v28 = vcombine.low %v2890_v47, %v2897_v0  ;;  %v1643_v49 = vrot.slane %v4927_v16, %v4310_v18  ;;  %v1650_v63 = vrot.slane %v4927_v16, %v4313_v19  ;;  %v1657_v1 = vrot.slane %v4927_v16, %v4316_v20  ;;  %3409 = vperm.xlu0 %3993, %v3204_v48   ;;  %v3224_v3 = vpop.permute.xlu0 %3223 }
 0x11b   :  { %v2370_v54 = vrot.slane %v2356_v61, %v4327_v32  ;;  %v2373_v8 = vcombine.low %v754_v6, %v761_v53  ;;  %v768_v41 = vrot.slane %v4961_v45, %v4307_v17  ;;  %v2677_v57 = vcombine.low %v2669_v26, %v2676_v4  ;;  %v3797_v4 = vld [vmem:[%s5428_s1 + $0x88] sm:$0xff] }
 0x11c   :  { %3355 = vperm.xlu1 %3994, %v2898_v28   ;;  %v3213_v50 = vrot.slane %v3205_v5, %v4327_v32  ;;  %v775_v42 = vrot.slane %v4961_v45, %v4310_v18  ;;  %v3220_v10 = vrot.slane %v3206_v58, %v4327_v32  ;;  %v2907_v16 = vrot.slane %v2899_v62, %v4327_v32  ;;  %v3796_v28 = vld [vmem:[%s5428_s1 + $0x80] sm:$0xff] }
 0x11d   :  { %v3227_v15 = vpop.permute.xlu1 %3226  ;;  %v2371_v33 = vcombine.low %v2363_v30, %v2370_v54  ;;  %v782_v39 = vrot.slane %v4961_v45, %v4313_v19  ;;  %v789_v9 = vrot.slane %v4961_v45, %v4316_v20  ;;  %v2914_v22 = vrot.slane %v2900_v38, %v4327_v32  ;;  %v3780_v30 = vld [vmem:[%s5428_s1] sm:$0xff] }
 0x11e   :  { %v5010_v25 = vsub.s32 %v4733_v40, %v4304_v11  ;;  %v2916_v24 = vcombine.low %v1636_v31, %v1643_v49  ;;  %v2917_v43 = vcombine.low %v1650_v63, %v1657_v1  ;;  %3316 = vperm.xlu0 %3993, %v2677_v57   ;;  %v3221_v44 = vcombine.low %v3213_v50, %v3220_v10 }
 0x11f   :  { %v5014_v27 = vsub.s32 %v4758_v13, %v4304_v11  ;;  %v2915_v23 = vcombine.low %v2907_v16, %v2914_v22  ;;  %v2380_v45 = vrot.slane %v2372_v21, %v4327_v32  ;;  %v2387_v7 = vrot.slane %v2373_v8, %v4327_v32  ;;  %v3798_v8 = vld [vmem:[%s5428_s1 + $0x90] sm:$0xff]  ;;  %v3800_v22 = vld [vmem:[%s5428_s1 + $0xa0] sm:$0xff] }
 0x120   :  { %3262 = vperm.xlu1 %3994, %v2371_v33   ;;  %v3427_v36 = vadd.s32 4294967280, %v4733_v40  ;;  %v2389_v2 = vcombine.low %v768_v41, %v775_v42  ;;  %v3419_v60 = vrot.slane %v3224_v3, %v5010_v25  ;;  %v2390_v51 = vcombine.low %v782_v39, %v789_v9  ;;  %v3799_v41 = vld [vmem:[%s5428_s1 + $0x98] sm:$0xff]  ;;  %v3782_v42 = vld [vmem:[%s5428_s1 + $0x10] sm:$0xff]  ;;  %v3801_v3 = vld [vmem:[%s5428_s1 + $0xa8] sm:$0xff] }
 0x121   :  { %v3272_v14 = vpop.permute.xlu1 %3271  ;;  %v3424_v46 = vrot.slane %v3227_v15, %v5014_v27  ;;  %v1664_v35 = vrot.slane %v229_v34, %v4307_v17  ;;  %v1671_v13 = vrot.slane %v229_v34, %v4310_v18  ;;  %v1678_v12 = vrot.slane %v229_v34, %v4313_v19  ;;  %v3781_v15 = vld [vmem:[%s5428_s1 + $0x8] sm:$0xff]  ;;  %v3783_v33 = vld [vmem:[%s5428_s1 + $0x18] sm:$0xff] }
 0x122   :  { %v1685_v37 = vrot.slane %v229_v34, %v4316_v20  ;;  %3412 = vperm.xlu0 %3993, %v3221_v44   ;;  %v2924_v52 = vrot.slane %v2916_v24, %v4327_v32  ;;  %v2931_v61 = vrot.slane %v2917_v43, %v4327_v32  ;;  %v2388_v29 = vcombine.low %v2380_v45, %v2387_v7  ;;  %v3784_v7 = vld [vmem:[%s5428_s1 + $0x20] sm:$0xff] }
 0x123   :  { %v5026_v56 = vsel %vm3425_vm1, %v3424_v46, %v3419_v60  ;;  %v3528_v62 = vrot.slane %v3272_v14, %v5010_v25  ;;  %v5033_v18 = vsub.s32 %v3427_v36, %v4304_v11  ;;  %v2933_v20 = vcombine.low %v1664_v35, %v1671_v13  ;;  %v3785_v36 = vld [vmem:[%s5428_s1 + $0x28] sm:$0xff]  ;;  %v3803_v35 = vld [vmem:[%s5428_s1 + $0xb8] sm:$0xff] }
 0x124   :  { %3358 = vperm.xlu1 %3994, %v2915_v23   ;;  %v2934_v38 = vcombine.low %v1678_v12, %v1685_v37  ;;  %v3434_v6 = vadd.s32 4294967272, %v4733_v40  ;;  %v2932_v53 = vcombine.low %v2924_v52, %v2931_v61  ;;  %v2397_v5 = vrot.slane %v2389_v2, %v4327_v32 }
 0x125   :  { %v3275_v59 = vpop.permute.xlu1 %3274  ;;  %v2404_v0 = vrot.slane %v2390_v51, %v4327_v32  ;;  %v2941_v58 = vrot.slane %v2933_v20, %v4327_v32  ;;  %v3953_v50 = vpack.c.bf16 %v3797_v4, %v3796_v28  ;;  %v3955_v39 = vpack.c.bf16 %v3781_v15, %v3780_v30  ;;  %v3802_v51 = vld [vmem:[%s5428_s1 + $0xb0] sm:$0xff] }
 0x126   :  { %v3532_v17 = vrot.slane %v3275_v59, %v5014_v27  ;;  %v2948_v48 = vrot.slane %v2934_v38, %v4327_v32  ;;  %v5055_v54 = vsub.s32 %v3434_v6, %v4304_v11  ;;  %v3957_v9 = vpack.c.bf16 %v3799_v41, %v3798_v8  ;;  %v3804_v38 = vld [vmem:[%s5428_s1 + $0xc0] sm:$0xff]  ;;  %v3806_v28 = vld [vmem:[%s5428_s1 + $0xd0] sm:$0xff]  ;;  %v3791_v8 = vld [vmem:[%s5428_s1 + $0x58] sm:$0xff] }
 0x127   :  { %v2405_v49 = vcombine.low %v2397_v5, %v2404_v0  ;;  %v3441_v44 = vadd.s32 4294967264, %v4733_v40  ;;  %3954 = vmatprep.subr.bf16.mxu0 %v3953_v50  ;;  %v3959_v14 = vpack.c.bf16 %v3783_v33, %v3782_v42  ;;  %v3961_v45 = vpack.c.bf16 %v3801_v3, %v3800_v22  ;;  %v3790_v15 = vld [vmem:[%s5428_s1 + $0x50] sm:$0xff]  ;;  %v3808_v50 = vld [vmem:[%s5428_s1 + $0xe0] sm:$0xff]  ;;  %v3809_v42 = vld [vmem:[%s5428_s1 + $0xe8] sm:$0xff] }
 0x128   :  { %v3533_v19 = vsel %vm3425_vm1, %v3532_v17, %v3528_v62  ;;  %3265 = vperm.xlu1 %3994, %v2388_v29   ;;  %v2949_v24 = vcombine.low %v2941_v58, %v2948_v48  ;;  %3956 = vmatpush3.bf16.msra.mxu0 %v3955_v39  ;;  %v4025_v52 = vmov 0.0   ;;  %v3963_v61 = vpack.c.bf16 %v3785_v36, %v3784_v7  ;;  %v3786_v17 = vld [vmem:[%s5428_s1 + $0x30] sm:$0xff]  ;;  %v3788_v48 = vld [vmem:[%s5428_s1 + $0x40] sm:$0xff] }
 0x129   :  { %v3320_v55 = vpop.permute.xlu1 %3319  ;;  %v3278_v47 = vpop.permute.xlu0 %3277  ;;  %3958 = vmatprep.subr.bf16.mxu0 %v3957_v9  ;;  %v5100_v37 = vsub.s32 %v3441_v44, %v4304_v11  ;;  %19 = vst [vmem:[#allocation2] sm:$0xf] %v4025_v52  ;;  %v3965_v62 = vpack.c.bf16 %v3803_v35, %v3802_v51  ;;  %v3977_v22 = vpack.c.bf16 %v3809_v42, %v3808_v50  ;;  %v3792_v3 = vld [vmem:[%s5428_s1 + $0x60] sm:$0xff]  ;;  %v3795_v51 = vld [vmem:[%s5428_s1 + $0x78] sm:$0xff] }
 0x12a   :  { %v3537_v34 = vrot.slane %v3278_v47, %v5033_v18  ;;  %v3607_v63 = vrot.slane %v3320_v55, %v5010_v25  ;;  %v3805_v55 = vld [vmem:[%s5428_s1 + $0xc8] sm:$0xff] }
 0x12b   :  { %v3969_v58 = vpack.c.bf16 %v3805_v55, %v3804_v38 }
 0x12c   :  { %v3538_v21 = vsel %vm3432_vm2, %v3537_v34, %v3533_v19  ;;  %3361 = vperm.xlu1 %3994, %v2932_v53   ;;  %3960 = vmatpush3.bf16.msra.mxu0 %v3959_v14 }
 0x12d   :  { %v3323_v26 = vpop.permute.xlu1 %3322  ;;  %v3374_v31 = vpop.permute.xlu0 %3373  ;;  %3962 = vmatprep.subr.bf16.mxu0 %v3961_v45 }
 0x12e   :  { %v3611_v1 = vrot.slane %v3323_v26, %v5014_v27  ;;  %v3695_v2 = vrot.slane %v3374_v31, %v5033_v18  ;;  %v3789_v26 = vld [vmem:[%s5428_s1 + $0x48] sm:$0xff] }
 0x12f   :  { %v3971_v30 = vpack.c.bf16 %v3789_v26, %v3788_v48 }
 0x130   :  { %v5067_v57 = vsel %vm3425_vm1, %v3611_v1, %v3607_v63  ;;  %3268 = vperm.xlu1 %3994, %v2405_v49   ;;  %3964 = vmatpush3.bf16.msra.mxu0 %v3963_v61 }
 0x131   :  { %v3368_v10 = vpop.permute.xlu1 %3367  ;;  %v3281_v16 = vpop.permute.xlu0 %3280  ;;  %3966 = vmatprep.subr.bf16.mxu0 %v3965_v62 }
 0x132   :  { %v3542_v43 = vrot.slane %v3281_v16, %v5055_v54  ;;  %v3686_v13 = vrot.slane %v3368_v10, %v5010_v25  ;;  %v3787_v25 = vld [vmem:[%s5428_s1 + $0x38] sm:$0xff]  ;;  %v3975_v16 = vpack.c.bf16 %v3791_v8, %v3790_v15 }
 0x133   :  { %v3967_v5 = vpack.c.bf16 %v3787_v25, %v3786_v17 }
 0x134   :  { %v3543_v23 = vsel %vm3439_vm3, %v3542_v43, %v3538_v21  ;;  %3364 = vperm.xlu1 %3994, %v2949_v24   ;;  %v3448_v21 = vadd.s32 4294967256, %v4733_v40  ;;  %v3793_v24 = vld [vmem:[%s5428_s1 + $0x68] sm:$0xff]  ;;  %v3810_v43 = vld [vmem:[%s5428_s1 + $0xf0] sm:$0xff] }
 0x135   :  { %v3371_v60 = vpop.permute.xlu1 %3370  ;;  %v3377_v46 = vpop.permute.xlu0 %3376  ;;  %3968 = vmatpush3.bf16.msra.mxu0 %v3967_v5  ;;  %v3979_v7 = vpack.c.bf16 %v3793_v24, %v3792_v3 }
 0x136   :  { %v3690_v12 = vrot.slane %v3371_v60, %v5014_v27  ;;  %v3700_v29 = vrot.slane %v3377_v46, %v5055_v54  ;;  %v5139_v63 = vsub.s32 %v3448_v21, %v4304_v11  ;;  %3970 = vmatprep.subr.bf16.mxu0 %v3969_v58  ;;  %v3794_v46 = vld [vmem:[%s5428_s1 + $0x70] sm:$0xff] }
 0x137   :  { %v3983_v61 = vpack.c.bf16 %v3795_v51, %v3794_v46 }
 0x138   :  { %v3691_v59 = vsel %vm3425_vm1, %v3690_v12, %v3686_v13  ;;  %vm3900_vm1 = vcmask 25600  }
 0x139   :  { %v3696_v27 = vsel %vm3432_vm2, %v3695_v2, %v3691_v59  ;;  %v3230_v19 = vpop.permute.xlu1 %3229  ;;  %v3284_v20 = vpop.permute.xlu0 %3283  ;;  %3972 = vmatpush3.bf16.msra.mxu0 %v3971_v30 }
 0x13a   :  { %v3701_v47 = vsel %vm3439_vm3, %v3700_v29, %v3696_v27  ;;  %v3431_v6 = vrot.slane %v3230_v19, %v5033_v18  ;;  %v3547_v53 = vrot.slane %v3284_v20, %v5100_v37 }
 0x13c   :  { %v3433_v0 = vsel %vm3432_vm2, %v3431_v6, %v5026_v56  ;;  %v3548_v34 = vsel %vm3446_vm4, %v3547_v53, %v3543_v23  ;;  %v3807_v56 = vld [vmem:[%s5428_s1 + $0xd8] sm:$0xff]  ;;  %v3455_v23 = vadd.s32 4294967248, %v4733_v40 }
 0x13d   :  { %v3380_v31 = vpop.permute.xlu0 %3379  ;;  %v3973_v1 = vpack.c.bf16 %v3807_v56, %v3806_v28  ;;  %v3326_v41 = vpop.permute.xlu1 %3325 }
 0x13e   :  { %v3705_v4 = vrot.slane %v3380_v31, %v5100_v37  ;;  %v3616_v33 = vrot.slane %v3326_v41, %v5033_v18  ;;  %v5185_v52 = vsub.s32 %v3455_v23, %v4304_v11  ;;  %v3483_v23 = vadd.s32 4294967216, %v4733_v40 }
 0x13f   :  { %3974 = vmatprep.subr.bf16.mxu0 %v3973_v1 }
 0x140   :  { %v3706_v49 = vsel %vm3446_vm4, %v3705_v4, %v3701_v47  ;;  %v3617_v39 = vsel %vm3432_vm2, %v3616_v33, %v5067_v57  ;;  %v3811_v57 = vld [vmem:[%s5428_s1 + $0xf8] sm:$0xff]  ;;  %3976 = vmatpush3.bf16.msra.mxu0 %v3975_v16 }
 0x141   :  { %v3287_v10 = vpop.permute.xlu0 %3286  ;;  %3978 = vmatprep.subr.bf16.mxu0 %v3977_v22  ;;  %v3981_v60 = vpack.c.bf16 %v3811_v57, %v3810_v43  ;;  %v3469_v57 = vadd.s32 4294967232, %v4733_v40 }
 0x142   :  { %v3552_v9 = vrot.slane %v3287_v10, %v5139_v63 }
 0x143   :  { %v3233_v18 = vpop.permute.xlu1 %3232 }
 0x144   :  { %v3438_v44 = vrot.slane %v3233_v18, %v5055_v54  ;;  %v3553_v14 = vsel %vm3453_vm5, %v3552_v9, %v3548_v34  ;;  %3980 = vmatpush3.bf16.msra.mxu0 %v3979_v7  ;;  %v3462_v18 = vadd.s32 4294967240, %v4733_v40  ;;  %v3490_v7 = vadd.s32 4294967208, %v4733_v40 }
 0x145   :  { %v3383_v45 = vpop.permute.xlu0 %3382  ;;  %3982 = vmatprep.subr.bf16.mxu0 %v3981_v60  ;;  %v3497_v60 = vadd.s32 4294967200, %v4733_v40 }
 0x146   :  { %v3440_v36 = vsel %vm3439_vm3, %v3438_v44, %v3433_v0  ;;  %v3710_v2 = vrot.slane %v3383_v45, %v5139_v63  ;;  %v5263_v45 = vsub.s32 %v3462_v18, %v4304_v11 }
 0x147   :  { %v3329_v35 = vpop.permute.xlu1 %3328 }
 0x148   :  { %v3621_v13 = vrot.slane %v3329_v35, %v5055_v54  ;;  %v5182_v12 = vsel %vm3453_vm5, %v3710_v2, %v3706_v49  ;;  %3984 = vmatpush3.bf16.msra.mxu0 %v3983_v61  ;;  %v5269_v2 = vsub.s32 %v3469_v57, %v4304_v11  ;;  %v3504_v35 = vadd.s32 4294967192, %v4733_v40 }
 0x14a   :  { %v3622_v59 = vsel %vm3439_vm3, %v3621_v13, %v3617_v39  ;;  %v3290_v62 = vpop.permute.xlu0 %3289  ;;  %v3511_v13 = vadd.s32 4294967184, %v4733_v40 }
 0x14b   :  { %v3236_v29 = vpop.permute.xlu1 %3235  ;;  %v3557_v25 = vrot.slane %v3290_v62, %v5185_v52 }
 0x14c   :  { %v3445_v17 = vrot.slane %v3236_v29, %v5100_v37  ;;  %v3518_v29 = vadd.s32 4294967176, %v4733_v40 }
 0x14d   :  { %v5192_v27 = vsel %vm3460_vm6, %v3557_v25, %v3553_v14  ;;  %v3476_v14 = vadd.s32 4294967224, %v4733_v40  ;;  %v5290_v25 = vsub.s32 %v3490_v7, %v4304_v11 }
 0x14e   :  { %v3447_v54 = vsel %vm3446_vm4, %v3445_v17, %v3440_v36 }
 0x14f   :  { %v5194_v19 = vpop.permute.xlu0 %3385  ;;  %v5275_v51 = vsub.s32 %v3476_v14, %v4304_v11 }
 0x150   :  { %v3715_v61 = vrot.slane %v5194_v19, %v5185_v52 }
 0x152   :  { %v3332_v20 = vpop.permute.xlu1 %3331 }
 0x153   :  { %v3626_v38 = vrot.slane %v3332_v20, %v5100_v37  ;;  %v5297_v20 = vsub.s32 %v3497_v60, %v4304_v11 }
 0x155   :  { %v3627_v55 = vsel %vm3446_vm4, %v3626_v38, %v3622_v59  ;;  %v5198_v47 = vpop.permute.xlu0 %3292  ;;  %v5282_v59 = vsub.s32 %v3483_v23, %v4304_v11 }
 0x156   :  { %v3562_v62 = vrot.slane %v5198_v47, %v5263_v45  ;;  %v5304_v47 = vsub.s32 %v3504_v35, %v4304_v11 }
 0x157   :  { %v3239_v6 = vpop.permute.xlu1 %3238 }
 0x158   :  { %v3452_v53 = vrot.slane %v3239_v6, %v5139_v63  ;;  %v5307_v6 = vsub.s32 %v3511_v13, %v4304_v11 }
 0x15a   :  { %v3454_v5 = vsel %vm3453_vm5, %v3452_v53, %v3447_v54  ;;  %v5202_v0 = vpop.permute.xlu0 %3388 }
 0x15b   :  { %v3335_v34 = vpop.permute.xlu1 %3334  ;;  %v3720_v17 = vrot.slane %v5202_v0, %v5263_v45 }
 0x15c   :  { %v3631_v21 = vrot.slane %v3335_v34, %v5139_v63 }
 0x15e   :  { %v5206_v58 = vsel %vm3453_vm5, %v3631_v21, %v3627_v55  ;;  %v5318_v21 = vsub.s32 %v3518_v29, %v4304_v11 }
 0x15f   :  { %v3242_v48 = vpop.permute.xlu1 %3241 }
 0x160   :  { %v3459_v37 = vrot.slane %v3242_v48, %v5185_v52  ;;  %v5209_v26 = vpop.permute.xlu0 %3295  ;;  %v3563_v48 = vsel %vm3467_vm7, %v3562_v62, %v5192_v27 }
 0x161   :  { %v3567_v54 = vrot.slane %v5209_v26, %v5269_v2 }
 0x162   :  { %v5212_v31 = vsel %vm3460_vm6, %v3459_v37, %v3454_v5  ;;  %v3716_v5 = vsel %vm3460_vm6, %v3715_v61, %v5182_v12 }
 0x163   :  { %v3721_v37 = vsel %vm3467_vm7, %v3720_v17, %v3716_v5 }
 0x164   :  { %v5214_v28 = vpop.permute.xlu1 %3337 }
 0x165   :  { %v5216_v56 = vpop.permute.xlu0 %3391 }
 0x166   :  { %v3725_v19 = vrot.slane %v5216_v56, %v5269_v2  ;;  %v3568_v56 = vsel %vm3474_vm8, %v3567_v54, %v3563_v48 }
 0x169   :  { %v5218_v4 = vpop.permute.xlu1 %3244  ;;  %v5220_v30 = vpop.permute.xlu0 %3298 }
 0x16a   :  { %v3572_v38 = vrot.slane %v5220_v30, %v5275_v51  ;;  %v3726_v30 = vsel %vm3474_vm8, %v3725_v19, %v3721_v37  ;;  %v3466_v5 = vrot.slane %v5218_v4, %v5263_v45 }
 0x16c   :  { %v3573_v27 = vsel %vm3481_vm9, %v3572_v38, %v3568_v56 }
 0x16d   :  { %v5222_v49 = vpop.permute.xlu1 %3340  ;;  %v5224_v63 = vpop.permute.xlu0 %3394 }
 0x16e   :  { %v3730_v55 = vrot.slane %v5224_v63, %v5275_v51 }
 0x171   :  { %v5226_v1 = vpop.permute.xlu0 %3301 }
 0x172   :  { %v5228_v15 = vpop.permute.xlu1 %3247  ;;  %v3577_v0 = vrot.slane %v5226_v1, %v5282_v59 }
 0x174   :  { %v3578_v57 = vsel %vm3488_vm10, %v3577_v0, %v3573_v27  ;;  %v3641_v0 = vrot.slane %v5222_v49, %v5263_v45  ;;  %v3468_v49 = vsel %vm3467_vm7, %v3466_v5, %v5212_v31 }
 0x176   :  { %v5230_v8 = vpop.permute.xlu0 %3397 }
 0x177   :  { %v5232_v41 = vpop.permute.xlu1 %3343  ;;  %v3735_v34 = vrot.slane %v5230_v8, %v5282_v59  ;;  %v3731_v8 = vsel %vm3481_vm9, %v3730_v55, %v3726_v30  ;;  %v3636_v55 = vrot.slane %v5214_v28, %v5185_v52 }
 0x178   :  { %v3646_v48 = vrot.slane %v5232_v41, %v5269_v2 }
 0x179   :  { %v3736_v14 = vsel %vm3488_vm10, %v3735_v34, %v3731_v8  ;;  %v3473_v34 = vrot.slane %v5228_v15, %v5269_v2  ;;  %v3637_v52 = vsel %vm3460_vm6, %v3636_v55, %v5206_v58 }
 0x17a   :  { %v5234_v50 = vpop.permute.xlu0 %3304  ;;  %v3642_v15 = vsel %vm3467_vm7, %v3641_v0, %v3637_v52 }
 0x17b   :  { %v5236_v42 = vpop.permute.xlu1 %3250  ;;  %v3582_v26 = vrot.slane %v5234_v50, %v5290_v25  ;;  %v3647_v58 = vsel %vm3474_vm8, %v3646_v48, %v3642_v15 }
 0x17d   :  { %v3583_v23 = vsel %vm3495_vm11, %v3582_v26, %v3578_v57  ;;  %v3480_v26 = vrot.slane %v5236_v42, %v5275_v51 }
 0x17f   :  { %v5238_v33 = vpop.permute.xlu0 %3400 }
 0x180   :  { %v5240_v10 = vpop.permute.xlu1 %3346  ;;  %v3740_v12 = vrot.slane %v5238_v33, %v5290_v25 }
 0x182   :  { %v3741_v7 = vsel %vm3495_vm11, %v3740_v12, %v3736_v14  ;;  %v3651_v12 = vrot.slane %v5240_v10, %v5275_v51  ;;  %v3475_v10 = vsel %vm3474_vm8, %v3473_v34, %v3468_v49  ;;  %v84_v14 = vld [vmem:[#allocation2] sm:$0xf] }
 0x183   :  { %v5242_v16 = vpop.permute.xlu0 %3307  ;;  %v3482_v31 = vsel %vm3481_vm9, %v3480_v26, %v3475_v10 }
 0x184   :  { %v5244_v39 = vpop.permute.xlu1 %3253  ;;  %v3587_v63 = vrot.slane %v5242_v16, %v5297_v20  ;;  %v3652_v2 = vsel %vm3481_vm9, %v3651_v12, %v3647_v58 }
 0x185   :  { %v3487_v28 = vrot.slane %v5244_v39, %v5282_v59 }
 0x186   :  { %v3588_v60 = vsel %vm3502_vm12, %v3587_v63, %v3583_v23 }
 0x188   :  { %v5246_v9 = vpop.permute.xlu0 %3403 }
 0x189   :  { %v5248_v22 = vpop.permute.xlu1 %3349  ;;  %v3745_v11 = vrot.slane %v5246_v9, %v5297_v20 }
 0x18a   :  { %v3656_v4 = vrot.slane %v5248_v22, %v5282_v59 }
 0x18c   :  { %v5250_v3 = vpop.permute.xlu0 %3310  ;;  %v3657_v59 = vsel %vm3488_vm10, %v3656_v4, %v3652_v2 }
 0x18d   :  { %v5252_v24 = vpop.permute.xlu1 %3256  ;;  %v3592_v50 = vrot.slane %v5250_v3, %v5304_v47 }
 0x18e   :  { %v3494_v41 = vrot.slane %v5252_v24, %v5290_v25 }
 0x18f   :  { %v3593_v13 = vsel %vm3509_vm13, %v3592_v50, %v3588_v60 }
 0x190   :  { %v5255_v43 = vpop.permute.xlu0 %3406 }
 0x191   :  { %v3750_v33 = vrot.slane %v5255_v43, %v5304_v47  ;;  %v3746_v43 = vsel %vm3502_vm12, %v3745_v11, %v3741_v7 }
 0x192   :  { %v5258_v44 = vpop.permute.xlu1 %3352 }
 0x193   :  { %v3751_v61 = vsel %vm3509_vm13, %v3750_v33, %v3746_v43  ;;  %v3661_v42 = vrot.slane %v5258_v44, %v5290_v25  ;;  %v3489_v44 = vsel %vm3488_vm10, %v3487_v28, %v3482_v31 }
 0x194   :  { %v3496_v56 = vsel %vm3495_vm11, %v3494_v41, %v3489_v44 }
 0x195   :  { %v5266_v36 = vpop.permute.xlu0 %3313 }
 0x196   :  { %v5272_v46 = vpop.permute.xlu1 %3259  ;;  %v3597_v16 = vrot.slane %v5266_v36, %v5307_v6 }
 0x197   :  { %v3501_v39 = vrot.slane %v5272_v46, %v5297_v20 }
 0x198   :  { %v3598_v62 = vsel %vm3516_vm14, %v3597_v16, %v3593_v13 }
 0x199   :  { %v3410_v40 = vpop.permute.xlu0 %3409  ;;  %v3503_v30 = vsel %vm3502_vm12, %v3501_v39, %v3496_v56 }
 0x19a   :  { %v3755_v9 = vrot.slane %v3410_v40, %v5307_v6 }
 0x19b   :  { %v5309_v53 = vpop.permute.xlu1 %3355 }
 0x19c   :  { %v3756_v17 = vsel %vm3516_vm14, %v3755_v9, %v3751_v61  ;;  %v3666_v22 = vrot.slane %v5309_v53, %v5297_v20  ;;  %v3662_v20 = vsel %vm3495_vm11, %v3661_v42, %v3657_v59 }
 0x19d   :  { %v3317_v1 = vpop.permute.xlu0 %3316 }
 0x19e   :  { %v3602_v3 = vrot.slane %v3317_v1, %v5318_v21  ;;  %v3667_v63 = vsel %vm3502_vm12, %v3666_v22, %v3662_v20 }
 0x19f   :  { %v3263_v18 = vpop.permute.xlu1 %3262 }
 0x1a0   :  { %v3603_v54 = vsel %vm3523_vm15, %v3602_v3, %v3598_v62  ;;  %v3508_v24 = vrot.slane %v3263_v18, %v5304_v47  ;;  %v3916_v3 = vld [vmem:[%s5429_s2] ss:$0 sm:$0xff] }
 0x1a1   :  { %v3413_v35 = vpop.permute.xlu0 %3412 }
 0x1a2   :  { %v3760_v29 = vrot.slane %v3413_v35, %v5318_v21 }
 0x1a3   :  { %v3359_v36 = vpop.permute.xlu1 %3358 }
 0x1a4   :  { %v3761_v19 = vsel %vm3523_vm15, %v3760_v29, %v3756_v17  ;;  %v3671_v51 = vrot.slane %v3359_v36, %v5304_v47  ;;  %v3510_v47 = vsel %vm3509_vm13, %v3508_v24, %v3503_v30 }
 0x1a5   :  { %v3764_v40 = vsel %vm3762_vm0, %v3761_v19, %v3603_v54 }
 0x1a6   :  { %v3672_v1 = vsel %vm3509_vm13, %v3671_v51, %v3667_v63 }
 0x1a7   :  { %v3266_v38 = vpop.permute.xlu1 %3265 }
 0x1a8   :  { %v3515_v25 = vrot.slane %v3266_v38, %v5307_v6 }
 0x1aa   :  { %v3517_v8 = vsel %vm3516_vm14, %v3515_v25, %v3510_v47 }
 0x1ab   :  { %v3362_v37 = vpop.permute.xlu1 %3361 }
 0x1ac   :  { %v3676_v46 = vrot.slane %v3362_v37, %v5307_v6 }
 0x1ae   :  { %v3677_v6 = vsel %vm3516_vm14, %v3676_v46, %v3672_v1 }
 0x1af   :  { %v3269_v45 = vpop.permute.xlu1 %3268 }
 0x1b0   :  { %v3522_v53 = vrot.slane %v3269_v45, %v5318_v21 }
 0x1b2   :  { %v3524_v50 = vsel %vm3523_vm15, %v3522_v53, %v3517_v8 }
 0x1b3   :  { %v3365_v11 = vpop.permute.xlu1 %3364 }
 0x1b4   :  { %v3681_v27 = vrot.slane %v3365_v11, %v5318_v21 }
 0x1b6   :  { %v3682_v33 = vsel %vm3523_vm15, %v3681_v27, %v3677_v6 }
 0x1b7   :  { %v3763_v18 = vsel %vm3762_vm0, %v3682_v33, %v3524_v50 }
 0x1b8   :  { %v3765_v57 = vcombine.low %v3763_v18, %v3764_v40 }
 0x1ba   :  { %v3772_v16 = vrot.slane %v3765_v57, %v4327_v32 }
 0x1bc   :  { %v3774_v9 = vadd.f32 %v3772_v16, %v84_v14 }
 0x1be   :  { %3775 = vst [vmem:[#allocation2] sm:$0xf] %v3774_v9 }
 0x1c5   :  { %v3917_v23 = vld.sshfl [vmem:[#allocation2] sm:$0x33 pattern:$0x76325410] }
 0x1c6   :  { %v3827_v7 = vcombine.high %v3917_v23, %v3917_v23 }
 0x1c8   :  { %3894 = vmatprep.mubr.f32.mxu0 %v3827_v7 }
 0x1c9   :  { %3895 = vmatmul.mubr.f32.vlgmr.msra.gmra.mrb[0].mxu0 %v3917_v23 }
 0x29c   :  { %v3950_v21 = vpop.f32.mrb[0].mxu0 }
 0x29d   :  { %v3951_v60 = vpop.f32.mrb[1].mxu0 }
 0x29e   :  { %v3952_v43 = vadd.f32 %v3951_v60, %v3950_v21 }
 0x2a0   :  { %v3897_v35 = vadd.f32 %v3952_v43, %v3916_v3 }
 0x2a2   :  { %3901 = vst.msk [vmem:[#allocation3] sm:$0x3] %vm3900_vm1, %v3897_v35 }
 0x2a3   :  { %4006 = shalt.err (!%p4003_p4)
}
 0x2a4   :  { %s4007_s18 = scalar_lea.hbm %s5430_s3, 32 }
 0x2a5   :  { %p4008_p5 = scmp.ne.s32.totalorder %s5430_s3, %s4007_s18  ;;  %p4011_p6 = scmp.lt.u32.totalorder %s4007_s18, %s5430_s3 }
 0x2a7   :  { %p4013_p7 = pnand %p4011_p6, %p4008_p5 }
 0x2a9   :  { %4016 = shalt.err (!%p4013_p7)
}
 0x2aa   :  { %3911 = dma.vmem_to_hbm [thread:$0]  %s3909_s14, 32, %s5430_s3, [#allocation4]  }
 0x2ab   :  { %4017 = dma.done.wait [#allocation4], 32  }
 0x2ac   :  { %4018 = vsyncadd [#allocation4], 4294967264 }
 0x2ad   :  { %3915 = vsyncpa [#allocation4], 1 }

</bundles_post_ra>
